<compile_context>
chip_gen: v6e
topology: v6e:2x2x1
jax: 0.10.0
libtpu: 0.0.40
codegen_flags: <defaults>
</compile_context>

<pallas_src>
import functools
import math

import jax
import jax.numpy as jnp
from jax.experimental import pallas as pl
from jax.experimental.pallas import tpu as pltpu

LN_EPS = 1e-5
VMEM_LIMIT = 64 * 1024 * 1024  # raise v5e's 16 MiB scoped default; safe on v6e/v7x


def _round_up(x, m):
    return (x + m - 1) // m * m


def _pick_row_tile(m):
    # Large row tiles amortize the ~0.35us per-grid-step overhead and keep the
    # store path lane/sublane dense; tiny demo shapes use the 8-aligned extent.
    if m >= 2048:
        return 512
    if m >= 256:
        return 256
    return _round_up(max(m, 8), 8)


def _pick_col_tile(n, k):
    # Keep the resident (k, tn) bf16 weight block <= ~8 MiB so double-buffered
    # weights fit v7x's 32 MiB scoped default; below that threshold keep the
    # whole weight resident (minimal HBM weight traffic).
    max_elems = 4 * 1024 * 1024  # 8 MiB in bf16
    if n * k <= max_elems:
        return n
    for t in (2048, 1024, 512, 256, 128):
        if n % t == 0 and t * k <= max_elems:
            return t
    for t in (2048, 1024, 512, 256, 128):
        if n % t == 0:
            return t
    return n


# ----------------------------------------------------------------------------
# One-time (eager) parameter preparation: transposed bf16 weights, (1,N) biases
# ----------------------------------------------------------------------------
def prepare_params(p):
    """Call once, outside jit — removes per-forward transpose/cast kernels."""
    f32 = jnp.float32
    bf16 = jnp.bfloat16
    return {
        "ln1_g": p["ln1_g"].reshape(1, -1).astype(f32),
        "ln1_b": p["ln1_b"].reshape(1, -1).astype(f32),
        "w_qkv": jnp.transpose(p["attn_in_w"]).astype(bf16),    # (D, 3D)
        "b_qkv": p["attn_in_b"].reshape(1, -1).astype(f32),
        "w_out": jnp.transpose(p["attn_out_w"]).astype(bf16),   # (D, D)
        "b_out": p["attn_out_b"].reshape(1, -1).astype(f32),
        "ln2_g": p["ln2_g"].reshape(1, -1).astype(f32),
        "ln2_b": p["ln2_b"].reshape(1, -1).astype(f32),
        "w_fc": jnp.transpose(p["mlp_fc_w"]).astype(bf16),      # (D, 4D)
        "b_fc": p["mlp_fc_b"].reshape(1, -1).astype(f32),
        "w_proj": jnp.transpose(p["mlp_proj_w"]).astype(bf16),  # (4D, D)
        "b_proj": p["mlp_proj_b"].reshape(1, -1).astype(f32),
    }


# ----------------------------------------------------------------------------
# Kernel 1: fused LayerNorm + matmul + bias (+ optional QuickGELU)
# ----------------------------------------------------------------------------
def _ln_matmul_kernel(x_ref, g_ref, b_ref, w_ref, bias_ref, o_ref, *, act):
    x = x_ref[...]                                        # (tm, D) f32
    mu = jnp.mean(x, axis=-1, keepdims=True)
    xc = x - mu
    var = jnp.mean(xc * xc, axis=-1, keepdims=True)
    xn = xc * jax.lax.rsqrt(var + LN_EPS)
    xln = xn * g_ref[...] + b_ref[...]                    # LayerNorm in f32
    y = jnp.dot(xln.astype(jnp.bfloat16), w_ref[...],     # bf16 x bf16 -> f32 on MXU
                preferred_element_type=jnp.float32)
    y = y + bias_ref[...]
    if act == "quickgelu":
        # QuickGELU: x * sigmoid(1.702 x); reciprocal goes to the EUP slot.
        y = y * pl.reciprocal(1.0 + jnp.exp(-1.702 * y), approx=True)
    o_ref[...] = y.astype(o_ref.dtype)


def ln_matmul(x, gamma, beta, w_bf16, bias, *, act=None, out_dtype=jnp.bfloat16):
    """out = act( LayerNorm(x) @ w + bias ), row-tiled (and N-tiled for huge w)."""
    M, D = x.shape
    Dw, N = w_bf16.shape
    assert D == Dw
    tm = _pick_row_tile(M)
    tn = _pick_col_tile(N, D)
    Mp = _round_up(M, tm)
    if Mp != M:
        x = jnp.pad(x, ((0, Mp - M), (0, 0)))
    out_bytes = jnp.dtype(out_dtype).itemsize

    out = pl.pallas_call(
        functools.partial(_ln_matmul_kernel, act=act),
        out_shape=jax.ShapeDtypeStruct((Mp, N), out_dtype),
        grid_spec=pltpu.PrefetchScalarGridSpec(
            num_scalar_prefetch=0,
            grid=(Mp // tm, N // tn),
            in_specs=[
                pl.BlockSpec((tm, D), lambda i, j: (i, 0)),
                pl.BlockSpec((1, D), lambda i, j: (0, 0)),
                pl.BlockSpec((1, D), lambda i, j: (0, 0)),
                pl.BlockSpec((D, tn), lambda i, j: (0, j)),   # weight (resident if tn == N)
                pl.BlockSpec((1, tn), lambda i, j: (0, j)),
            ],
            out_specs=pl.BlockSpec((tm, tn), lambda i, j: (i, j)),
        ),
        compiler_params=pltpu.CompilerParams(
            dimension_semantics=("parallel", "parallel"),
            vmem_limit_bytes=VMEM_LIMIT),
        cost_estimate=pl.CostEstimate(
            flops=2 * Mp * D * N,
            transcendentals=(Mp * N if act == "quickgelu" else 0) + Mp,
            bytes_accessed=Mp * D * 4 + D * N * 2 + Mp * N * out_bytes),
    )(x.astype(jnp.float32), gamma, beta, w_bf16, bias)
    return out[:M] if Mp != M else out


# ----------------------------------------------------------------------------
# Kernel 2: matmul + bias + residual add (f32 epilogue)
# ----------------------------------------------------------------------------
def _matmul_residual_kernel(a_ref, w_ref, bias_ref, r_ref, o_ref):
    y = jnp.dot(a_ref[...], w_ref[...], preferred_element_type=jnp.float32)
    o_ref[...] = (r_ref[...] + y + bias_ref[...]).astype(o_ref.dtype)


def matmul_bias_residual(a_bf16, w_bf16, bias, residual):
    """out = residual + a @ w + bias, row-tiled, f32 output."""
    M, K = a_bf16.shape
    Kw, N = w_bf16.shape
    assert K == Kw and residual.shape == (M, N)
    tm = _pick_row_tile(M)
    tn = _pick_col_tile(N, K)
    Mp = _round_up(M, tm)
    if Mp != M:
        a_bf16 = jnp.pad(a_bf16, ((0, Mp - M), (0, 0)))
        residual = jnp.pad(residual, ((0, Mp - M), (0, 0)))

    out = pl.pallas_call(
        _matmul_residual_kernel,
        out_shape=jax.ShapeDtypeStruct((Mp, N), jnp.float32),
        grid_spec=pltpu.PrefetchScalarGridSpec(
            num_scalar_prefetch=0,
            grid=(Mp // tm, N // tn),
            in_specs=[
                pl.BlockSpec((tm, K), lambda i, j: (i, 0)),
                pl.BlockSpec((K, tn), lambda i, j: (0, j)),
                pl.BlockSpec((1, tn), lambda i, j: (0, j)),
                pl.BlockSpec((tm, tn), lambda i, j: (i, j)),
            ],
            out_specs=pl.BlockSpec((tm, tn), lambda i, j: (i, j)),
        ),
        compiler_params=pltpu.CompilerParams(
            dimension_semantics=("parallel", "parallel"),
            vmem_limit_bytes=VMEM_LIMIT),
        cost_estimate=pl.CostEstimate(
            flops=2 * Mp * K * N,
            transcendentals=0,
            bytes_accessed=Mp * K * 2 + K * N * 2 + 2 * Mp * N * 4),
    )(a_bf16.astype(jnp.bfloat16), w_bf16, bias, residual.astype(jnp.float32))
    return out[:M] if Mp != M else out


# ----------------------------------------------------------------------------
# Kernel 3: per-batch attention (all heads) + out_proj + bias + residual fused
# ----------------------------------------------------------------------------
def _attn_block_kernel(*refs, n_head, dh, scale, causal, has_mask):
    if has_mask:
        qkv_ref, mask_ref, wo_ref, bo_ref, res_ref, o_ref = refs
    else:
        qkv_ref, wo_ref, bo_ref, res_ref, o_ref = refs
        mask_ref = None
    D = n_head * dh
    qkv = qkv_ref[0]                                      # (L, 3D) bf16
    L = qkv.shape[0]

    if causal:
        row = jax.lax.broadcasted_iota(jnp.int32, (L, L), 0)
        col = jax.lax.broadcasted_iota(jnp.int32, (L, L), 1)
        keep = col <= row                                 # in-kernel causal mask

    heads = []
    for h in range(n_head):                               # unrolled; n_head is small
        q = qkv[:, h * dh:(h + 1) * dh]
        k = qkv[:, D + h * dh:D + (h + 1) * dh]
        v = qkv[:, 2 * D + h * dh:2 * D + (h + 1) * dh]
        # q @ k^T without materializing a transpose (contract last dims).
        s = jax.lax.dot_general(q, k, (((1,), (1,)), ((), ())),
                                preferred_element_type=jnp.float32) * scale
        if causal:
            s = jnp.where(keep, s, -jnp.inf)
        elif mask_ref is not None:
            s = s + mask_ref[...]                         # additive mask, f32
        m = jnp.max(s, axis=-1, keepdims=True)
        p = jnp.exp(s - m)
        l = jnp.sum(p, axis=-1, keepdims=True)
        o = jnp.dot(p.astype(jnp.bfloat16), v, preferred_element_type=jnp.float32)
        # Normalize the (L, dh) PV output with an EUP reciprocal instead of
        # dividing the (L, L) score tile on the VALU.
        heads.append(o * pl.reciprocal(l, approx=True))

    attn = jnp.concatenate(heads, axis=-1).astype(jnp.bfloat16)   # (L, D), lane-dense
    y = jnp.dot(attn, wo_ref[...], preferred_element_type=jnp.float32)
    o_ref[0] = (res_ref[0] + y + bo_ref[...]).astype(o_ref.dtype)


def attention_outproj_residual(qkv_bf16, w_out, b_out, residual, attn_mask, *,
                               n_head, causal, scale):
    """qkv: (B, L, 3D) bf16, residual: (B, L, D) f32 -> (B, L, D) f32."""
    B, L, threeD = qkv_bf16.shape
    D = threeD // 3
    dh = D // n_head
    has_mask = (attn_mask is not None) and (not causal)

    in_specs = [pl.BlockSpec((1, L, threeD), lambda b: (b, 0, 0))]
    args = [qkv_bf16]
    if has_mask:
        in_specs.append(pl.BlockSpec((L, L), lambda b: (0, 0)))
        args.append(attn_mask.astype(jnp.float32))
    in_specs += [
        pl.BlockSpec((D, D), lambda b: (0, 0)),           # out_proj weight, resident
        pl.BlockSpec((1, D), lambda b: (0, 0)),
        pl.BlockSpec((1, L, D), lambda b: (b, 0, 0)),     # residual tile
    ]
    args += [w_out, b_out, residual.astype(jnp.float32)]

    return pl.pallas_call(
        functools.partial(_attn_block_kernel, n_head=n_head, dh=dh, scale=scale,
                          causal=causal, has_mask=has_mask),
        out_shape=jax.ShapeDtypeStruct((B, L, D), jnp.float32),
        grid_spec=pltpu.PrefetchScalarGridSpec(
            num_scalar_prefetch=0,
            grid=(B,),
            in_specs=in_specs,
            out_specs=pl.BlockSpec((1, L, D), lambda b: (b, 0, 0)),
        ),
        compiler_params=pltpu.CompilerParams(
            dimension_semantics=("parallel",),
            vmem_limit_bytes=VMEM_LIMIT),
        cost_estimate=pl.CostEstimate(
            flops=4 * B * n_head * L * L * dh + 2 * B * L * D * D,
            transcendentals=B * n_head * L * (L + 1),
            bytes_accessed=(B * L * threeD * 2 + D * D * 2 + D * 4
                            + 2 * B * L * D * 4
                            + (L * L * 4 if has_mask else 0))),
    )(*args)


# ----------------------------------------------------------------------------
# Forward pass (ResidualAttentionBlock, eval semantics)
# ----------------------------------------------------------------------------
def residual_attention_block(prepared, x, attn_mask=None, *, n_head, causal=False):
    """x: (seq_len, batch, d_model) — PyTorch nn.MultiheadAttention layout.

    A single entry transpose puts the activation in batch-major (B, L, D)
    layout so all reshapes downstream are free and the attention kernel gets
    contiguous per-batch slabs (no head split/merge transposes, no q/k/v
    slices).  In a multi-block transformer the entry/exit transposes amortize
    across the whole stack.
    """
    L, B, D = x.shape
    dh = D // n_head
    xb = jnp.transpose(x, (1, 0, 2)).astype(jnp.float32)   # (B, L, D)
    x2 = xb.reshape(B * L, D)

    # ---- attention branch: LN1 fused into QKV projection ----
    qkv = ln_matmul(x2, prepared["ln1_g"], prepared["ln1_b"],
                    prepared["w_qkv"], prepared["b_qkv"],
                    act=None, out_dtype=jnp.bfloat16)
    qkv = qkv.reshape(B, L, 3 * D)                          # free reshape

    # per-batch attention over all heads, fused out_proj + bias + residual
    x_attn = attention_outproj_residual(
        qkv, prepared["w_out"], prepared["b_out"], xb, attn_mask,
        n_head=n_head, causal=causal, scale=1.0 / math.sqrt(dh))  # (B, L, D) f32
    x_attn2 = x_attn.reshape(B * L, D)

    # ---- MLP branch: LN2 + c_fc + QuickGELU fused, residual fused into c_proj ----
    h = ln_matmul(x_attn2, prepared["ln2_g"], prepared["ln2_b"],
                  prepared["w_fc"], prepared["b_fc"],
                  act="quickgelu", out_dtype=jnp.bfloat16)
    y = matmul_bias_residual(h, prepared["w_proj"], prepared["b_proj"], x_attn2)

    return jnp.transpose(y.reshape(B, L, D), (1, 0, 2))     # back to (L, B, D)


# ----------------------------------------------------------------------------
# Parameters (deterministic, synthetic; PyTorch (out, in) weight layout)
# ----------------------------------------------------------------------------
def init_params(key, d_model):
    ks = jax.random.split(key, 10)
    s = 0.08
    return {
        "ln1_g": 1.0 + 0.05 * jax.random.normal(ks[0], (d_model,), jnp.float32),
        "ln1_b": 0.05 * jax.random.normal(ks[1], (d_model,), jnp.float32),
        "attn_in_w": s * jax.random.normal(ks[2], (3 * d_model, d_model), jnp.float32),
        "attn_in_b": 0.02 * jax.random.normal(ks[3], (3 * d_model,), jnp.float32),
        "attn_out_w": s * jax.random.normal(ks[4], (d_model, d_model), jnp.float32),
        "attn_out_b": 0.02 * jax.random.normal(ks[5], (d_model,), jnp.float32),
        "ln2_g": 1.0 + 0.05 * jax.random.normal(ks[6], (d_model,), jnp.float32),
        "ln2_b": 0.05 * jax.random.normal(ks[7], (d_model,), jnp.float32),
        "mlp_fc_w": s * jax.random.normal(ks[8], (4 * d_model, d_model), jnp.float32),
        "mlp_fc_b": jnp.zeros((4 * d_model,), jnp.float32),
        "mlp_proj_w": 0.04 * jax.random.normal(ks[9], (d_model, 4 * d_model), jnp.float32),
        "mlp_proj_b": jnp.zeros((d_model,), jnp.float32),
    }


# ----------------------------------------------------------------------------
# Pure-JAX f32 reference (mirrors the PyTorch module)
# ----------------------------------------------------------------------------
def reference_block(params, x, attn_mask, n_head):
    L, B, D = x.shape
    dh = D // n_head

    def ln(t, g, b):
        mu = t.mean(-1, keepdims=True)
        var = ((t - mu) ** 2).mean(-1, keepdims=True)
        return (t - mu) / jnp.sqrt(var + LN_EPS) * g + b

    h = ln(x, params["ln1_g"], params["ln1_b"])
    qkv = h @ params["attn_in_w"].T + params["attn_in_b"]
    q, k, v = qkv[..., :D], qkv[..., D:2 * D], qkv[..., 2 * D:]

    def heads(t):
        return t.reshape(L, B, n_head, dh).transpose(1, 2, 0, 3)  # (B, H, L, dh)

    q, k, v = heads(q), heads(k), heads(v)
    s = jnp.einsum("bhqd,bhkd->bhqk", q, k) / math.sqrt(dh)
    if attn_mask is not None:
        s = s + attn_mask
    p = jax.nn.softmax(s, axis=-1)
    o = jnp.einsum("bhqk,bhkd->bhqd", p, v)
    o = o.transpose(2, 0, 1, 3).reshape(L, B, D)
    o = o @ params["attn_out_w"].T + params["attn_out_b"]
    x1 = x + o
    h2 = ln(x1, params["ln2_g"], params["ln2_b"])
    f = h2 @ params["mlp_fc_w"].T + params["mlp_fc_b"]
    f = f * jax.nn.sigmoid(1.702 * f)
    f = f @ params["mlp_proj_w"].T + params["mlp_proj_b"]
    return x1 + f


# ----------------------------------------------------------------------------
# Demo
# ----------------------------------------------------------------------------
if __name__ == "__main__":
    SEQ, BATCH, D_MODEL, N_HEAD = 8, 2, 64, 4

    key = jax.random.PRNGKey(0)
    k_x, k_p = jax.random.split(key)
    x = jax.random.normal(k_x, (SEQ, BATCH, D_MODEL), jnp.float32)
    raw_params = init_params(k_p, D_MODEL)

    # One-time, eager weight preparation (transpose + bf16 cast) — outside jit.
    prepared = prepare_params(raw_params)

    # CLIP-style causal mask, generated in-kernel (causal=True).
    fwd = jax.jit(functools.partial(residual_attention_block,
                                    n_head=N_HEAD, causal=True))
    y = fwd(prepared, x)
    jax.block_until_ready(y)

    assert y.shape == (SEQ, BATCH, D_MODEL), y.shape
    assert bool(jnp.all(jnp.isfinite(y)))

    # Correctness vs pure-f32 reference (bf16 MXU inputs -> relaxed tolerance).
    mask = jnp.triu(jnp.full((SEQ, SEQ), -jnp.inf, jnp.float32), k=1)
    y_ref = reference_block(raw_params, x, mask, N_HEAD)
    max_err = float(jnp.max(jnp.abs(y - y_ref)))
    assert max_err < 0.12, f"max abs err {max_err}"

    print("KERNEL_OK")
</pallas_src>

<mosaic_0001>
module attributes {stable_mosaic.version = 11 : i64} {
  func.func @_ln_matmul_kernel(%arg0: i32, %arg1: i32, %arg2: memref<16x64xf32, #tpu.memory_space<vmem>>, %arg3: memref<1x64xf32, #tpu.memory_space<vmem>>, %arg4: memref<1x64xf32, #tpu.memory_space<vmem>>, %arg5: memref<64x192xbf16, #tpu.memory_space<vmem>>, %arg6: memref<1x192xf32, #tpu.memory_space<vmem>>, %arg7: memref<16x192xbf16, #tpu.memory_space<vmem>>) attributes {dimension_semantics = [#tpu.dimension_semantics<parallel>, #tpu.dimension_semantics<parallel>], iteration_bounds = array<i64: 1, 1>, scalar_prefetch = 0 : i64, scratch_operands = 0 : i64, tpu.core_type = #tpu.core_type<tc>, window_params = [{transform_indices = @transform_0, window_bounds = array<i64: 16, 64>}, {pipeline_mode = #tpu.pipeline_mode<synchronous>, transform_indices = @transform_1, window_bounds = array<i64: 1, 64>}, {pipeline_mode = #tpu.pipeline_mode<synchronous>, transform_indices = @transform_2, window_bounds = array<i64: 1, 64>}, {transform_indices = @transform_3, window_bounds = array<i64: 64, 192>}, {transform_indices = @transform_4, window_bounds = array<i64: 1, 192>}, {transform_indices = @transform_5, window_bounds = array<i64: 16, 192>}]} {
    %c0 = arith.constant 0 : index
    %c0_0 = arith.constant 0 : index
    %0 = vector.load %arg2[%c0, %c0_0] : memref<16x64xf32, #tpu.memory_space<vmem>>, vector<16x64xf32>
    %cst = arith.constant dense<0.000000e+00> : vector<16xf32>
    %1 = vector.multi_reduction <add>, %0, %cst [1] : vector<16x64xf32> to vector<16xf32>
    %2 = vector.shape_cast %1 : vector<16xf32> to vector<16x1xf32>
    %cst_1 = arith.constant 6.400000e+01 : f32
    %3 = vector.broadcast %cst_1 : f32 to vector<16x1xf32>
    %4 = arith.divf %2, %3 : vector<16x1xf32>
    %5 = vector.broadcast %4 : vector<16x1xf32> to vector<16x64xf32>
    %6 = arith.subf %0, %5 : vector<16x64xf32>
    %7 = arith.mulf %6, %6 : vector<16x64xf32>
    %cst_2 = arith.constant dense<0.000000e+00> : vector<16xf32>
    %8 = vector.multi_reduction <add>, %7, %cst_2 [1] : vector<16x64xf32> to vector<16xf32>
    %9 = vector.shape_cast %8 : vector<16xf32> to vector<16x1xf32>
    %cst_3 = arith.constant 6.400000e+01 : f32
    %10 = vector.broadcast %cst_3 : f32 to vector<16x1xf32>
    %11 = arith.divf %9, %10 : vector<16x1xf32>
    %cst_4 = arith.constant 9.99999974E-6 : f32
    %12 = vector.broadcast %cst_4 : f32 to vector<16x1xf32>
    %13 = arith.addf %11, %12 : vector<16x1xf32>
    %14 = math.rsqrt %13 : vector<16x1xf32>
    %15 = vector.broadcast %14 : vector<16x1xf32> to vector<16x64xf32>
    %16 = arith.mulf %6, %15 : vector<16x64xf32>
    %c0_5 = arith.constant 0 : index
    %c0_6 = arith.constant 0 : index
    %17 = vector.load %arg3[%c0_5, %c0_6] : memref<1x64xf32, #tpu.memory_space<vmem>>, vector<1x64xf32>
    %18 = vector.broadcast %17 : vector<1x64xf32> to vector<16x64xf32>
    %19 = arith.mulf %16, %18 : vector<16x64xf32>
    %c0_7 = arith.constant 0 : index
    %c0_8 = arith.constant 0 : index
    %20 = vector.load %arg4[%c0_7, %c0_8] : memref<1x64xf32, #tpu.memory_space<vmem>>, vector<1x64xf32>
    %21 = vector.broadcast %20 : vector<1x64xf32> to vector<16x64xf32>
    %22 = arith.addf %19, %21 : vector<16x64xf32>
    %23 = arith.truncf %22 : vector<16x64xf32> to vector<16x64xbf16>
    %c0_9 = arith.constant 0 : index
    %c0_10 = arith.constant 0 : index
    %24 = vector.load %arg5[%c0_9, %c0_10] : memref<64x192xbf16, #tpu.memory_space<vmem>>, vector<64x192xbf16>
    %cst_11 = arith.constant dense<0.000000e+00> : vector<16x192xf32>
    %25 = tpu.matmul %23, %24, %cst_11 {dimension_numbers = #tpu.dot_dimension_numbers<[1], [0], [0], [1], [0, 0, 1, 1], [], []>} : vector<16x64xbf16>, vector<64x192xbf16>, vector<16x192xf32> -> vector<16x192xf32>
    %c0_12 = arith.constant 0 : index
    %c0_13 = arith.constant 0 : index
    %26 = vector.load %arg6[%c0_12, %c0_13] : memref<1x192xf32, #tpu.memory_space<vmem>>, vector<1x192xf32>
    %27 = vector.broadcast %26 : vector<1x192xf32> to vector<16x192xf32>
    %28 = arith.addf %25, %27 : vector<16x192xf32>
    %29 = arith.truncf %28 : vector<16x192xf32> to vector<16x192xbf16>
    %c0_14 = arith.constant 0 : index
    %c0_15 = arith.constant 0 : index
    %30 = vector.load %arg7[%c0_14, %c0_15] : memref<16x192xbf16, #tpu.memory_space<vmem>>, vector<16x192xbf16>
    tpu.vector_store %arg7[%c0_14, %c0_15], %29 {strides = array<i32>} : memref<16x192xbf16, #tpu.memory_space<vmem>>, vector<16x192xbf16>,
    return
  }
  func.func @transform_0(%arg0: i32, %arg1: i32) -> (i32, i32) {
    %c0_i32 = arith.constant 0 : i32
    %c0_i32_0 = arith.constant 0 : i32
    return %arg0, %c0_i32 : i32, i32
  }
  func.func @transform_1(%arg0: i32, %arg1: i32) -> (i32, i32) {
    %c0_i32 = arith.constant 0 : i32
    %c0_i32_0 = arith.constant 0 : i32
    %c0_i32_1 = arith.constant 0 : i32
    return %c0_i32, %c0_i32_0 : i32, i32
  }
  func.func @transform_2(%arg0: i32, %arg1: i32) -> (i32, i32) {
    %c0_i32 = arith.constant 0 : i32
    %c0_i32_0 = arith.constant 0 : i32
    %c0_i32_1 = arith.constant 0 : i32
    return %c0_i32, %c0_i32_0 : i32, i32
  }
  func.func @transform_3(%arg0: i32, %arg1: i32) -> (i32, i32) {
    %c0_i32 = arith.constant 0 : i32
    %c0_i32_0 = arith.constant 0 : i32
    return %c0_i32, %arg1 : i32, i32
  }
  func.func @transform_4(%arg0: i32, %arg1: i32) -> (i32, i32) {
    %c0_i32 = arith.constant 0 : i32
    %c0_i32_0 = arith.constant 0 : i32
    return %c0_i32, %arg1 : i32, i32
  }
  func.func @transform_5(%arg0: i32, %arg1: i32) -> (i32, i32) {
    %c0_i32 = arith.constant 0 : i32
    return %arg0, %arg1 : i32, i32
  }
}

module attributes {stable_mosaic.version = 11 : i64} {
  func.func @_attn_block_kernel(%arg0: i32, %arg1: memref<1x8x192xbf16, #tpu.memory_space<vmem>>, %arg2: memref<64x64xbf16, #tpu.memory_space<vmem>>, %arg3: memref<1x64xf32, #tpu.memory_space<vmem>>, %arg4: memref<1x8x64xf32, #tpu.memory_space<vmem>>, %arg5: memref<1x8x64xf32, #tpu.memory_space<vmem>>) attributes {dimension_semantics = [#tpu.dimension_semantics<parallel>], iteration_bounds = array<i64: 2>, scalar_prefetch = 0 : i64, scratch_operands = 0 : i64, tpu.core_type = #tpu.core_type<tc>, window_params = [{transform_indices = @transform_0, window_bounds = array<i64: 1, 8, 192>}, {pipeline_mode = #tpu.pipeline_mode<synchronous>, transform_indices = @transform_1, window_bounds = array<i64: 64, 64>}, {pipeline_mode = #tpu.pipeline_mode<synchronous>, transform_indices = @transform_2, window_bounds = array<i64: 1, 64>}, {transform_indices = @transform_3, window_bounds = array<i64: 1, 8, 64>}, {transform_indices = @transform_4, window_bounds = array<i64: 1, 8, 64>}]} {
    %c0 = arith.constant 0 : index
    %c0_0 = arith.constant 0 : index
    %c0_1 = arith.constant 0 : index
    %0 = vector.load %arg1[%c0, %c0_0, %c0_1] : memref<1x8x192xbf16, #tpu.memory_space<vmem>>, vector<1x8x192xbf16>
    %1 = vector.shape_cast %0 : vector<1x8x192xbf16> to vector<8x192xbf16>
    %2 = tpu.iota {dimensions = array<i32: 0>} : vector<8x8xi32>
    %3 = tpu.iota {dimensions = array<i32: 1>} : vector<8x8xi32>
    %4 = arith.cmpi sle, %3, %2 : vector<8x8xi32>
    %5 = vector.extract_strided_slice %1 {offsets = [0, 0], sizes = [8, 16], strides = [1, 1]} : vector<8x192xbf16> to vector<8x16xbf16>
    %6 = vector.extract_strided_slice %1 {offsets = [0, 64], sizes = [8, 16], strides = [1, 1]} : vector<8x192xbf16> to vector<8x16xbf16>
    %7 = vector.extract_strided_slice %1 {offsets = [0, 128], sizes = [8, 16], strides = [1, 1]} : vector<8x192xbf16> to vector<8x16xbf16>
    %cst = arith.constant dense<0.000000e+00> : vector<8x8xf32>
    %8 = tpu.matmul %5, %6, %cst {dimension_numbers = #tpu.dot_dimension_numbers<[1], [1], [0], [0], [0, 0, 1, 0], [], []>} : vector<8x16xbf16>, vector<8x16xbf16>, vector<8x8xf32> -> vector<8x8xf32>
    %cst_2 = arith.constant 2.500000e-01 : f32
    %9 = vector.broadcast %cst_2 : f32 to vector<8x8xf32>
    %10 = arith.mulf %8, %9 : vector<8x8xf32>
    %cst_3 = arith.constant 0xFF800000 : f32
    %11 = vector.broadcast %cst_3 : f32 to vector<8x8xf32>
    %12 = arith.select %4, %10, %11 : vector<8x8xi1>, vector<8x8xf32>
    %cst_4 = arith.constant dense<0xFF800000> : vector<8xf32>
    %13 = vector.multi_reduction <maximumf>, %12, %cst_4 [1] : vector<8x8xf32> to vector<8xf32>
    %14 = vector.shape_cast %13 : vector<8xf32> to vector<8x1xf32>
    %15 = vector.broadcast %14 : vector<8x1xf32> to vector<8x8xf32>
    %16 = arith.subf %12, %15 : vector<8x8xf32>
    %17 = math.exp %16 : vector<8x8xf32>
    %cst_5 = arith.constant dense<0.000000e+00> : vector<8xf32>
    %18 = vector.multi_reduction <add>, %17, %cst_5 [1] : vector<8x8xf32> to vector<8xf32>
    %19 = vector.shape_cast %18 : vector<8xf32> to vector<8x1xf32>
    %20 = arith.truncf %17 : vector<8x8xf32> to vector<8x8xbf16>
    %cst_6 = arith.constant dense<0.000000e+00> : vector<8x16xf32>
    %21 = tpu.matmul %20, %7, %cst_6 {dimension_numbers = #tpu.dot_dimension_numbers<[1], [0], [0], [1], [0, 0, 1, 1], [], []>} : vector<8x8xbf16>, vector<8x16xbf16>, vector<8x16xf32> -> vector<8x16xf32>
    %22 = tpu.reciprocal %19 {approx = true} : vector<8x1xf32> -> vector<8x1xf32>
    %23 = vector.broadcast %22 : vector<8x1xf32> to vector<8x16xf32>
    %24 = arith.mulf %21, %23 : vector<8x16xf32>
    %25 = vector.extract_strided_slice %1 {offsets = [0, 16], sizes = [8, 16], strides = [1, 1]} : vector<8x192xbf16> to vector<8x16xbf16>
    %26 = vector.extract_strided_slice %1 {offsets = [0, 80], sizes = [8, 16], strides = [1, 1]} : vector<8x192xbf16> to vector<8x16xbf16>
    %27 = vector.extract_strided_slice %1 {offsets = [0, 144], sizes = [8, 16], strides = [1, 1]} : vector<8x192xbf16> to vector<8x16xbf16>
    %cst_7 = arith.constant dense<0.000000e+00> : vector<8x8xf32>
    %28 = tpu.matmul %25, %26, %cst_7 {dimension_numbers = #tpu.dot_dimension_numbers<[1], [1], [0], [0], [0, 0, 1, 0], [], []>} : vector<8x16xbf16>, vector<8x16xbf16>, vector<8x8xf32> -> vector<8x8xf32>
    %cst_8 = arith.constant 2.500000e-01 : f32
    %29 = vector.broadcast %cst_8 : f32 to vector<8x8xf32>
    %30 = arith.mulf %28, %29 : vector<8x8xf32>
    %cst_9 = arith.constant 0xFF800000 : f32
    %31 = vector.broadcast %cst_9 : f32 to vector<8x8xf32>
    %32 = arith.select %4, %30, %31 : vector<8x8xi1>, vector<8x8xf32>
    %cst_10 = arith.constant dense<0xFF800000> : vector<8xf32>
    %33 = vector.multi_reduction <maximumf>, %32, %cst_10 [1] : vector<8x8xf32> to vector<8xf32>
    %34 = vector.shape_cast %33 : vector<8xf32> to vector<8x1xf32>
    %35 = vector.broadcast %34 : vector<8x1xf32> to vector<8x8xf32>
    %36 = arith.subf %32, %35 : vector<8x8xf32>
    %37 = math.exp %36 : vector<8x8xf32>
    %cst_11 = arith.constant dense<0.000000e+00> : vector<8xf32>
    %38 = vector.multi_reduction <add>, %37, %cst_11 [1] : vector<8x8xf32> to vector<8xf32>
    %39 = vector.shape_cast %38 : vector<8xf32> to vector<8x1xf32>
    %40 = arith.truncf %37 : vector<8x8xf32> to vector<8x8xbf16>
    %cst_12 = arith.constant dense<0.000000e+00> : vector<8x16xf32>
    %41 = tpu.matmul %40, %27, %cst_12 {dimension_numbers = #tpu.dot_dimension_numbers<[1], [0], [0], [1], [0, 0, 1, 1], [], []>} : vector<8x8xbf16>, vector<8x16xbf16>, vector<8x16xf32> -> vector<8x16xf32>
    %42 = tpu.reciprocal %39 {approx = true} : vector<8x1xf32> -> vector<8x1xf32>
    %43 = vector.broadcast %42 : vector<8x1xf32> to vector<8x16xf32>
    %44 = arith.mulf %41, %43 : vector<8x16xf32>
    %45 = vector.extract_strided_slice %1 {offsets = [0, 32], sizes = [8, 16], strides = [1, 1]} : vector<8x192xbf16> to vector<8x16xbf16>
    %46 = vector.extract_strided_slice %1 {offsets = [0, 96], sizes = [8, 16], strides = [1, 1]} : vector<8x192xbf16> to vector<8x16xbf16>
    %47 = vector.extract_strided_slice %1 {offsets = [0, 160], sizes = [8, 16], strides = [1, 1]} : vector<8x192xbf16> to vector<8x16xbf16>
    %cst_13 = arith.constant dense<0.000000e+00> : vector<8x8xf32>
    %48 = tpu.matmul %45, %46, %cst_13 {dimension_numbers = #tpu.dot_dimension_numbers<[1], [1], [0], [0], [0, 0, 1, 0], [], []>} : vector<8x16xbf16>, vector<8x16xbf16>, vector<8x8xf32> -> vector<8x8xf32>
    %cst_14 = arith.constant 2.500000e-01 : f32
    %49 = vector.broadcast %cst_14 : f32 to vector<8x8xf32>
    %50 = arith.mulf %48, %49 : vector<8x8xf32>
    %cst_15 = arith.constant 0xFF800000 : f32
    %51 = vector.broadcast %cst_15 : f32 to vector<8x8xf32>
    %52 = arith.select %4, %50, %51 : vector<8x8xi1>, vector<8x8xf32>
    %cst_16 = arith.constant dense<0xFF800000> : vector<8xf32>
    %53 = vector.multi_reduction <maximumf>, %52, %cst_16 [1] : vector<8x8xf32> to vector<8xf32>
    %54 = vector.shape_cast %53 : vector<8xf32> to vector<8x1xf32>
    %55 = vector.broadcast %54 : vector<8x1xf32> to vector<8x8xf32>
    %56 = arith.subf %52, %55 : vector<8x8xf32>
    %57 = math.exp %56 : vector<8x8xf32>
    %cst_17 = arith.constant dense<0.000000e+00> : vector<8xf32>
    %58 = vector.multi_reduction <add>, %57, %cst_17 [1] : vector<8x8xf32> to vector<8xf32>
    %59 = vector.shape_cast %58 : vector<8xf32> to vector<8x1xf32>
    %60 = arith.truncf %57 : vector<8x8xf32> to vector<8x8xbf16>
    %cst_18 = arith.constant dense<0.000000e+00> : vector<8x16xf32>
    %61 = tpu.matmul %60, %47, %cst_18 {dimension_numbers = #tpu.dot_dimension_numbers<[1], [0], [0], [1], [0, 0, 1, 1], [], []>} : vector<8x8xbf16>, vector<8x16xbf16>, vector<8x16xf32> -> vector<8x16xf32>
    %62 = tpu.reciprocal %59 {approx = true} : vector<8x1xf32> -> vector<8x1xf32>
    %63 = vector.broadcast %62 : vector<8x1xf32> to vector<8x16xf32>
    %64 = arith.mulf %61, %63 : vector<8x16xf32>
    %65 = vector.extract_strided_slice %1 {offsets = [0, 48], sizes = [8, 16], strides = [1, 1]} : vector<8x192xbf16> to vector<8x16xbf16>
    %66 = vector.extract_strided_slice %1 {offsets = [0, 112], sizes = [8, 16], strides = [1, 1]} : vector<8x192xbf16> to vector<8x16xbf16>
    %67 = vector.extract_strided_slice %1 {offsets = [0, 176], sizes = [8, 16], strides = [1, 1]} : vector<8x192xbf16> to vector<8x16xbf16>
    %cst_19 = arith.constant dense<0.000000e+00> : vector<8x8xf32>
    %68 = tpu.matmul %65, %66, %cst_19 {dimension_numbers = #tpu.dot_dimension_numbers<[1], [1], [0], [0], [0, 0, 1, 0], [], []>} : vector<8x16xbf16>, vector<8x16xbf16>, vector<8x8xf32> -> vector<8x8xf32>
    %cst_20 = arith.constant 2.500000e-01 : f32
    %69 = vector.broadcast %cst_20 : f32 to vector<8x8xf32>
    %70 = arith.mulf %68, %69 : vector<8x8xf32>
    %cst_21 = arith.constant 0xFF800000 : f32
    %71 = vector.broadcast %cst_21 : f32 to vector<8x8xf32>
    %72 = arith.select %4, %70, %71 : vector<8x8xi1>, vector<8x8xf32>
    %cst_22 = arith.constant dense<0xFF800000> : vector<8xf32>
    %73 = vector.multi_reduction <maximumf>, %72, %cst_22 [1] : vector<8x8xf32> to vector<8xf32>
    %74 = vector.shape_cast %73 : vector<8xf32> to vector<8x1xf32>
    %75 = vector.broadcast %74 : vector<8x1xf32> to vector<8x8xf32>
    %76 = arith.subf %72, %75 : vector<8x8xf32>
    %77 = math.exp %76 : vector<8x8xf32>
    %cst_23 = arith.constant dense<0.000000e+00> : vector<8xf32>
    %78 = vector.multi_reduction <add>, %77, %cst_23 [1] : vector<8x8xf32> to vector<8xf32>
    %79 = vector.shape_cast %78 : vector<8xf32> to vector<8x1xf32>
    %80 = arith.truncf %77 : vector<8x8xf32> to vector<8x8xbf16>
    %cst_24 = arith.constant dense<0.000000e+00> : vector<8x16xf32>
    %81 = tpu.matmul %80, %67, %cst_24 {dimension_numbers = #tpu.dot_dimension_numbers<[1], [0], [0], [1], [0, 0, 1, 1], [], []>} : vector<8x8xbf16>, vector<8x16xbf16>, vector<8x16xf32> -> vector<8x16xf32>
    %82 = tpu.reciprocal %79 {approx = true} : vector<8x1xf32> -> vector<8x1xf32>
    %83 = vector.broadcast %82 : vector<8x1xf32> to vector<8x16xf32>
    %84 = arith.mulf %81, %83 : vector<8x16xf32>
    %85 = tpu.concatenate %24, %44, %64, %84 in 1 : vector<8x16xf32>, vector<8x16xf32>, vector<8x16xf32>, vector<8x16xf32> -> vector<8x64xf32>
    %86 = arith.truncf %85 : vector<8x64xf32> to vector<8x64xbf16>
    %c0_25 = arith.constant 0 : index
    %c0_26 = arith.constant 0 : index
    %87 = vector.load %arg2[%c0_25, %c0_26] : memref<64x64xbf16, #tpu.memory_space<vmem>>, vector<64x64xbf16>
    %cst_27 = arith.constant dense<0.000000e+00> : vector<8x64xf32>
    %88 = tpu.matmul %86, %87, %cst_27 {dimension_numbers = #tpu.dot_dimension_numbers<[1], [0], [0], [1], [0, 0, 1, 1], [], []>} : vector<8x64xbf16>, vector<64x64xbf16>, vector<8x64xf32> -> vector<8x64xf32>
    %c0_28 = arith.constant 0 : index
    %c0_29 = arith.constant 0 : index
    %c0_30 = arith.constant 0 : index
    %89 = vector.load %arg4[%c0_28, %c0_29, %c0_30] : memref<1x8x64xf32, #tpu.memory_space<vmem>>, vector<1x8x64xf32>
    %90 = vector.shape_cast %89 : vector<1x8x64xf32> to vector<8x64xf32>
    %91 = arith.addf %90, %88 : vector<8x64xf32>
    %c0_31 = arith.constant 0 : index
    %c0_32 = arith.constant 0 : index
    %92 = vector.load %arg3[%c0_31, %c0_32] : memref<1x64xf32, #tpu.memory_space<vmem>>, vector<1x64xf32>
    %93 = vector.broadcast %92 : vector<1x64xf32> to vector<8x64xf32>
    %94 = arith.addf %91, %93 : vector<8x64xf32>
    %c0_33 = arith.constant 0 : index
    %c0_34 = arith.constant 0 : index
    %c0_35 = arith.constant 0 : index
    %95 = vector.load %arg5[%c0_33, %c0_34, %c0_35] : memref<1x8x64xf32, #tpu.memory_space<vmem>>, vector<1x8x64xf32>
    %96 = vector.shape_cast %95 : vector<1x8x64xf32> to vector<8x64xf32>
    %97 = vector.shape_cast %94 : vector<8x64xf32> to vector<1x8x64xf32>
    tpu.vector_store %arg5[%c0_33, %c0_34, %c0_35], %97 {strides = array<i32>} : memref<1x8x64xf32, #tpu.memory_space<vmem>>, vector<1x8x64xf32>,
    return
  }
  func.func @transform_0(%arg0: i32) -> (i32, i32, i32) {
    %c0_i32 = arith.constant 0 : i32
    %c0_i32_0 = arith.constant 0 : i32
    %c0_i32_1 = arith.constant 0 : i32
    return %arg0, %c0_i32, %c0_i32_0 : i32, i32, i32
  }
  func.func @transform_1(%arg0: i32) -> (i32, i32) {
    %c0_i32 = arith.constant 0 : i32
    %c0_i32_0 = arith.constant 0 : i32
    %c0_i32_1 = arith.constant 0 : i32
    return %c0_i32, %c0_i32_0 : i32, i32
  }
  func.func @transform_2(%arg0: i32) -> (i32, i32) {
    %c0_i32 = arith.constant 0 : i32
    %c0_i32_0 = arith.constant 0 : i32
    %c0_i32_1 = arith.constant 0 : i32
    return %c0_i32, %c0_i32_0 : i32, i32
  }
  func.func @transform_3(%arg0: i32) -> (i32, i32, i32) {
    %c0_i32 = arith.constant 0 : i32
    %c0_i32_0 = arith.constant 0 : i32
    %c0_i32_1 = arith.constant 0 : i32
    return %arg0, %c0_i32, %c0_i32_0 : i32, i32, i32
  }
  func.func @transform_4(%arg0: i32) -> (i32, i32, i32) {
    %c0_i32 = arith.constant 0 : i32
    %c0_i32_0 = arith.constant 0 : i32
    %c0_i32_1 = arith.constant 0 : i32
    return %arg0, %c0_i32, %c0_i32_0 : i32, i32, i32
  }
}

module attributes {stable_mosaic.version = 11 : i64} {
  func.func @_ln_matmul_kernel(%arg0: i32, %arg1: i32, %arg2: memref<16x64xf32, #tpu.memory_space<vmem>>, %arg3: memref<1x64xf32, #tpu.memory_space<vmem>>, %arg4: memref<1x64xf32, #tpu.memory_space<vmem>>, %arg5: memref<64x256xbf16, #tpu.memory_space<vmem>>, %arg6: memref<1x256xf32, #tpu.memory_space<vmem>>, %arg7: memref<16x256xbf16, #tpu.memory_space<vmem>>) attributes {dimension_semantics = [#tpu.dimension_semantics<parallel>, #tpu.dimension_semantics<parallel>], iteration_bounds = array<i64: 1, 1>, scalar_prefetch = 0 : i64, scratch_operands = 0 : i64, tpu.core_type = #tpu.core_type<tc>, window_params = [{transform_indices = @transform_0, window_bounds = array<i64: 16, 64>}, {pipeline_mode = #tpu.pipeline_mode<synchronous>, transform_indices = @transform_1, window_bounds = array<i64: 1, 64>}, {pipeline_mode = #tpu.pipeline_mode<synchronous>, transform_indices = @transform_2, window_bounds = array<i64: 1, 64>}, {transform_indices = @transform_3, window_bounds = array<i64: 64, 256>}, {transform_indices = @transform_4, window_bounds = array<i64: 1, 256>}, {transform_indices = @transform_5, window_bounds = array<i64: 16, 256>}]} {
    %c0 = arith.constant 0 : index
    %c0_0 = arith.constant 0 : index
    %0 = vector.load %arg2[%c0, %c0_0] : memref<16x64xf32, #tpu.memory_space<vmem>>, vector<16x64xf32>
    %cst = arith.constant dense<0.000000e+00> : vector<16xf32>
    %1 = vector.multi_reduction <add>, %0, %cst [1] : vector<16x64xf32> to vector<16xf32>
    %2 = vector.shape_cast %1 : vector<16xf32> to vector<16x1xf32>
    %cst_1 = arith.constant 6.400000e+01 : f32
    %3 = vector.broadcast %cst_1 : f32 to vector<16x1xf32>
    %4 = arith.divf %2, %3 : vector<16x1xf32>
    %5 = vector.broadcast %4 : vector<16x1xf32> to vector<16x64xf32>
    %6 = arith.subf %0, %5 : vector<16x64xf32>
    %7 = arith.mulf %6, %6 : vector<16x64xf32>
    %cst_2 = arith.constant dense<0.000000e+00> : vector<16xf32>
    %8 = vector.multi_reduction <add>, %7, %cst_2 [1] : vector<16x64xf32> to vector<16xf32>
    %9 = vector.shape_cast %8 : vector<16xf32> to vector<16x1xf32>
    %cst_3 = arith.constant 6.400000e+01 : f32
    %10 = vector.broadcast %cst_3 : f32 to vector<16x1xf32>
    %11 = arith.divf %9, %10 : vector<16x1xf32>
    %cst_4 = arith.constant 9.99999974E-6 : f32
    %12 = vector.broadcast %cst_4 : f32 to vector<16x1xf32>
    %13 = arith.addf %11, %12 : vector<16x1xf32>
    %14 = math.rsqrt %13 : vector<16x1xf32>
    %15 = vector.broadcast %14 : vector<16x1xf32> to vector<16x64xf32>
    %16 = arith.mulf %6, %15 : vector<16x64xf32>
    %c0_5 = arith.constant 0 : index
    %c0_6 = arith.constant 0 : index
    %17 = vector.load %arg3[%c0_5, %c0_6] : memref<1x64xf32, #tpu.memory_space<vmem>>, vector<1x64xf32>
    %18 = vector.broadcast %17 : vector<1x64xf32> to vector<16x64xf32>
    %19 = arith.mulf %16, %18 : vector<16x64xf32>
    %c0_7 = arith.constant 0 : index
    %c0_8 = arith.constant 0 : index
    %20 = vector.load %arg4[%c0_7, %c0_8] : memref<1x64xf32, #tpu.memory_space<vmem>>, vector<1x64xf32>
    %21 = vector.broadcast %20 : vector<1x64xf32> to vector<16x64xf32>
    %22 = arith.addf %19, %21 : vector<16x64xf32>
    %23 = arith.truncf %22 : vector<16x64xf32> to vector<16x64xbf16>
    %c0_9 = arith.constant 0 : index
    %c0_10 = arith.constant 0 : index
    %24 = vector.load %arg5[%c0_9, %c0_10] : memref<64x256xbf16, #tpu.memory_space<vmem>>, vector<64x256xbf16>
    %cst_11 = arith.constant dense<0.000000e+00> : vector<16x256xf32>
    %25 = tpu.matmul %23, %24, %cst_11 {dimension_numbers = #tpu.dot_dimension_numbers<[1], [0], [0], [1], [0, 0, 1, 1], [], []>} : vector<16x64xbf16>, vector<64x256xbf16>, vector<16x256xf32> -> vector<16x256xf32>
    %c0_12 = arith.constant 0 : index
    %c0_13 = arith.constant 0 : index
    %26 = vector.load %arg6[%c0_12, %c0_13] : memref<1x256xf32, #tpu.memory_space<vmem>>, vector<1x256xf32>
    %27 = vector.broadcast %26 : vector<1x256xf32> to vector<16x256xf32>
    %28 = arith.addf %25, %27 : vector<16x256xf32>
    %cst_14 = arith.constant -1.702000e+00 : f32
    %29 = vector.broadcast %cst_14 : f32 to vector<16x256xf32>
    %30 = arith.mulf %29, %28 : vector<16x256xf32>
    %31 = math.exp %30 : vector<16x256xf32>
    %cst_15 = arith.constant 1.000000e+00 : f32
    %32 = vector.broadcast %cst_15 : f32 to vector<16x256xf32>
    %33 = arith.addf %32, %31 : vector<16x256xf32>
    %34 = tpu.reciprocal %33 {approx = true} : vector<16x256xf32> -> vector<16x256xf32>
    %35 = arith.mulf %28, %34 : vector<16x256xf32>
    %36 = arith.truncf %35 : vector<16x256xf32> to vector<16x256xbf16>
    %c0_16 = arith.constant 0 : index
    %c0_17 = arith.constant 0 : index
    %37 = vector.load %arg7[%c0_16, %c0_17] : memref<16x256xbf16, #tpu.memory_space<vmem>>, vector<16x256xbf16>
    tpu.vector_store %arg7[%c0_16, %c0_17], %36 {strides = array<i32>} : memref<16x256xbf16, #tpu.memory_space<vmem>>, vector<16x256xbf16>,
    return
  }
  func.func @transform_0(%arg0: i32, %arg1: i32) -> (i32, i32) {
    %c0_i32 = arith.constant 0 : i32
    %c0_i32_0 = arith.constant 0 : i32
    return %arg0, %c0_i32 : i32, i32
  }
  func.func @transform_1(%arg0: i32, %arg1: i32) -> (i32, i32) {
    %c0_i32 = arith.constant 0 : i32
    %c0_i32_0 = arith.constant 0 : i32
    %c0_i32_1 = arith.constant 0 : i32
    return %c0_i32, %c0_i32_0 : i32, i32
  }
  func.func @transform_2(%arg0: i32, %arg1: i32) -> (i32, i32) {
    %c0_i32 = arith.constant 0 : i32
    %c0_i32_0 = arith.constant 0 : i32
    %c0_i32_1 = arith.constant 0 : i32
    return %c0_i32, %c0_i32_0 : i32, i32
  }
  func.func @transform_3(%arg0: i32, %arg1: i32) -> (i32, i32) {
    %c0_i32 = arith.constant 0 : i32
    %c0_i32_0 = arith.constant 0 : i32
    return %c0_i32, %arg1 : i32, i32
  }
  func.func @transform_4(%arg0: i32, %arg1: i32) -> (i32, i32) {
    %c0_i32 = arith.constant 0 : i32
    %c0_i32_0 = arith.constant 0 : i32
    return %c0_i32, %arg1 : i32, i32
  }
  func.func @transform_5(%arg0: i32, %arg1: i32) -> (i32, i32) {
    %c0_i32 = arith.constant 0 : i32
    return %arg0, %arg1 : i32, i32
  }
}

module attributes {stable_mosaic.version = 11 : i64} {
  func.func @_matmul_residual_kernel(%arg0: i32, %arg1: i32, %arg2: memref<16x256xbf16, #tpu.memory_space<vmem>>, %arg3: memref<256x64xbf16, #tpu.memory_space<vmem>>, %arg4: memref<1x64xf32, #tpu.memory_space<vmem>>, %arg5: memref<16x64xf32, #tpu.memory_space<vmem>>, %arg6: memref<16x64xf32, #tpu.memory_space<vmem>>) attributes {dimension_semantics = [#tpu.dimension_semantics<parallel>, #tpu.dimension_semantics<parallel>], iteration_bounds = array<i64: 1, 1>, scalar_prefetch = 0 : i64, scratch_operands = 0 : i64, tpu.core_type = #tpu.core_type<tc>, window_params = [{transform_indices = @transform_0, window_bounds = array<i64: 16, 256>}, {transform_indices = @transform_1, window_bounds = array<i64: 256, 64>}, {transform_indices = @transform_2, window_bounds = array<i64: 1, 64>}, {transform_indices = @transform_3, window_bounds = array<i64: 16, 64>}, {transform_indices = @transform_4, window_bounds = array<i64: 16, 64>}]} {
    %c0 = arith.constant 0 : index
    %c0_0 = arith.constant 0 : index
    %0 = vector.load %arg2[%c0, %c0_0] : memref<16x256xbf16, #tpu.memory_space<vmem>>, vector<16x256xbf16>
    %c0_1 = arith.constant 0 : index
    %c0_2 = arith.constant 0 : index
    %1 = vector.load %arg3[%c0_1, %c0_2] : memref<256x64xbf16, #tpu.memory_space<vmem>>, vector<256x64xbf16>
    %cst = arith.constant dense<0.000000e+00> : vector<16x64xf32>
    %2 = tpu.matmul %0, %1, %cst {dimension_numbers = #tpu.dot_dimension_numbers<[1], [0], [0], [1], [0, 0, 1, 1], [], []>} : vector<16x256xbf16>, vector<256x64xbf16>, vector<16x64xf32> -> vector<16x64xf32>
    %c0_3 = arith.constant 0 : index
    %c0_4 = arith.constant 0 : index
    %3 = vector.load %arg5[%c0_3, %c0_4] : memref<16x64xf32, #tpu.memory_space<vmem>>, vector<16x64xf32>
    %4 = arith.addf %3, %2 : vector<16x64xf32>
    %c0_5 = arith.constant 0 : index
    %c0_6 = arith.constant 0 : index
    %5 = vector.load %arg4[%c0_5, %c0_6] : memref<1x64xf32, #tpu.memory_space<vmem>>, vector<1x64xf32>
    %6 = vector.broadcast %5 : vector<1x64xf32> to vector<16x64xf32>
    %7 = arith.addf %4, %6 : vector<16x64xf32>
    %c0_7 = arith.constant 0 : index
    %c0_8 = arith.constant 0 : index
    %8 = vector.load %arg6[%c0_7, %c0_8] : memref<16x64xf32, #tpu.memory_space<vmem>>, vector<16x64xf32>
    tpu.vector_store %arg6[%c0_7, %c0_8], %7 {strides = array<i32>} : memref<16x64xf32, #tpu.memory_space<vmem>>, vector<16x64xf32>,
    return
  }
  func.func @transform_0(%arg0: i32, %arg1: i32) -> (i32, i32) {
    %c0_i32 = arith.constant 0 : i32
    %c0_i32_0 = arith.constant 0 : i32
    return %arg0, %c0_i32 : i32, i32
  }
  func.func @transform_1(%arg0: i32, %arg1: i32) -> (i32, i32) {
    %c0_i32 = arith.constant 0 : i32
    %c0_i32_0 = arith.constant 0 : i32
    return %c0_i32, %arg1 : i32, i32
  }
  func.func @transform_2(%arg0: i32, %arg1: i32) -> (i32, i32) {
    %c0_i32 = arith.constant 0 : i32
    %c0_i32_0 = arith.constant 0 : i32
    return %c0_i32, %arg1 : i32, i32
  }
  func.func @transform_3(%arg0: i32, %arg1: i32) -> (i32, i32) {
    %c0_i32 = arith.constant 0 : i32
    return %arg0, %arg1 : i32, i32
  }
  func.func @transform_4(%arg0: i32, %arg1: i32) -> (i32, i32) {
    %c0_i32 = arith.constant 0 : i32
    return %arg0, %arg1 : i32, i32
  }
}

</mosaic_0001>

<bundles_post_ra>
// kernel: residual_attention_block.4
= control target key start
LH: loop header
LB: loop body
LE: loop exit
PB: predicated region body
PF: predicated region fallthrough
CT: control target
= control target key end

     0   :  { %vm23_vm0 = vcmask 523264   ;;  %v229_v15 = vmov 0   ;;  %v80_v40 = vlaneseq  ;;  %vm188_vm1 = vcmask 1043456   ;;  %s310_s0 = inlined_call_operand.vmem [shape: f32[16,64], index: 0, kind: input, shape index: {}]   ;;  %s311_s3 = inlined_call_operand.vmem [shape: bf16[64,192], index: 3, kind: input, shape index: {}]   ;;  %s312_s1 = inlined_call_operand.vmem [shape: f32[1,64], index: 1, kind: input, shape index: {}]   ;;  %s313_s2 = inlined_call_operand.vmem [shape: f32[1,64], index: 2, kind: input, shape index: {}]   ;;  %s314_s4 = inlined_call_operand.vmem [shape: f32[1,192], index: 4, kind: input, shape index: {}]   ;;  %s315_s5 = inlined_call_operand.vmem [shape: bf16[16,192], index: 5, kind: output, shape index: {}]  }
   0x1   :  { %v21_v0 = vld [vmem:[%s310_s0] sm:$0xff]  ;;  %v22_v1 = vld [vmem:[%s310_s0 + $0x8] sm:$0xff]  ;;  %v213_v14 = vld [vmem:[%s311_s3 + $0x34] ss:$8 sps:$4 sm:$0xff]   ;;  %165 = vmatprep.mubr.bf16.mxu0 %v229_v15  ;;  %vm189_vm2 = vcmask 523268  }
   0x2   :  { %v24_v2 = vsel %vm23_vm0, %v21_v0, 0.0  ;;  %v27_v3 = vsel %vm23_vm0, %v22_v1, 0.0  ;;  %v215_v16 = vld [vmem:[%s311_s3 + $0x30] ss:$8 sps:$4 sm:$0xff]   ;;  %141 = vmatprep.subr.bf16.mxu0 %v213_v14  ;;  %v216_v17 = vld [vmem:[%s311_s3 + $0x24] ss:$8 sps:$4 sm:$0xff]   ;;  %vm190_vm3 = vmor %vm189_vm2, %vm188_vm1 }
   0x3   :  { %25 = vadd.xlane.f32.xlu0 %v24_v2  ;;  %142 = vmatpush1.bf16.msra.mxu0 %v215_v16  ;;  %v218_v18 = vld [vmem:[%s311_s3 + $0x20] ss:$8 sps:$4 sm:$0xff]   ;;  %v219_v19 = vld [vmem:[%s311_s3 + $0x14] ss:$8 sps:$4 sm:$0xff]   ;;  %v221_v20 = vld [vmem:[%s311_s3 + $0x10] ss:$8 sps:$4 sm:$0xff]  }
   0x4   :  { %143 = vmatprep.subr.bf16.mxu0 %v216_v17  ;;  %v222_v21 = vld [vmem:[%s311_s3 + $0x4] ss:$8 sps:$4 sm:$0xff]   ;;  %v224_v22 = vld [vmem:[%s311_s3] ss:$8 sps:$4 sm:$0xff]   ;;  %v81_v41 = vshrl.u32 %v80_v40, 7 }
   0x5   :  { %v197_v31 = vld [vmem:[%s312_s1] ss:$0 sm:$0xff] }
   0x6   :  { %v198_v35 = vld [vmem:[%s313_s2] ss:$0 sm:$0xff]  ;;  %v82_v42 = vsub.s32 0, %v81_v41  ;;  %v86_v43 = vsub.s32 1, %v81_v41 }
   0x7   :  { %28 = vadd.xlane.f32.xlu0 %v27_v3  ;;  %144 = vmatpush1.bf16.msra.mxu0 %v218_v18  ;;  %v78_v44 = vld [vmem:[%s314_s4] sm:$0x3] }
   0x8   :  { %145 = vmatprep.subr.bf16.mxu0 %v219_v19  ;;  %v83_v45 = vrot.slane %v78_v44, %v82_v42  ;;  %v87_v46 = vrot.slane %v78_v44, %v86_v43 }
   0xb   :  { %146 = vmatpush1.bf16.msra.mxu0 %v221_v20 }
   0xc   :  { %147 = vmatprep.subr.bf16.mxu0 %v222_v21 }
   0xf   :  { %148 = vmatpush1.bf16.msra.mxu0 %v224_v22 }
  0x8c   :  { %v26_v4 = vpop.xlane.xlu0 %25 }
  0x8d   :  { %v31_v5 = vmul.f32 0.015625, %v26_v4 }
  0x8f   :  { %v33_v6 = vsub.f32 %v21_v0, %v31_v5 }
  0x90   :  { %v29_v7 = vpop.xlane.xlu0 %28 }
  0x91   :  { %v32_v8 = vmul.f32 0.015625, %v29_v7  ;;  %v35_v9 = vmul.f32 %v33_v6, %v33_v6 }
  0x93   :  { %v34_v10 = vsub.f32 %v22_v1, %v32_v8  ;;  %v37_v11 = vsel %vm23_vm0, %v35_v9, 0.0 }
  0x94   :  { %38 = vadd.xlane.f32.xlu1 %v37_v11 }
  0x95   :  { %v36_v12 = vmul.f32 %v34_v10, %v34_v10 }
  0x97   :  { %v40_v13 = vsel %vm23_vm0, %v36_v12, 0.0 }
  0x98   :  { %41 = vadd.xlane.f32.xlu1 %v40_v13 }
 0x11d   :  { %v39_v23 = vpop.xlane.xlu1 %38 }
 0x11e   :  { %v43_v24 = vmul.f32 0.015625, %v39_v23 }
 0x120   :  { %v45_v25 = vadd.f32 1e-05, %v43_v24 }
 0x121   :  { %v42_v26 = vpop.xlane.xlu1 %41 }
 0x122   :  { %225 = vrsqrt.f32 %v45_v25  ;;  %v44_v27 = vmul.f32 0.015625, %v42_v26 }
 0x124   :  { %v46_v28 = vadd.f32 1e-05, %v44_v27 }
 0x126   :  { %227 = vrsqrt.f32 %v46_v28 }
 0x12f   :  { %v226_v29 = vpop.eup %225 }
 0x130   :  { %v49_v30 = vmul.f32 %v226_v29, %v33_v6 }
 0x132   :  { %v58_v34 = vmul.f32 %v197_v31, %v49_v30 }
 0x133   :  { %v228_v32 = vpop.eup %227 }
 0x134   :  { %v50_v33 = vmul.f32 %v228_v32, %v34_v10  ;;  %v67_v37 = vadd.f32 %v198_v35, %v58_v34 }
 0x136   :  { %v59_v36 = vmul.f32 %v197_v31, %v50_v33 }
 0x138   :  { %v68_v38 = vadd.f32 %v198_v35, %v59_v36 }
 0x13a   :  { %v69_v39 = vpack.c.bf16 %v68_v38, %v67_v37 }
 0x13c   :  { %207 = vmatmul.mubr.msk.bf16.vlgmr.msra.gmra.mxu0 %vm23_vm0, %v69_v39 }
 0x1fc   :  { %v167_v47 = vpop.f32.mrf.mxu0 }
 0x1fd   :  { %v168_v49 = vadd.f32 %v167_v47, %v83_v45 }
 0x1fe   :  { %v169_v48 = vpop.f32.mrf.mxu0 }
 0x1ff   :  { %v170_v50 = vadd.f32 %v169_v48, %v87_v46 }
 0x200   :  { %v171_v51 = vpop.f32.mrf.mxu0 }
 0x201   :  { %v210_v52 = vpack.c.bf16 %v170_v50, %v168_v49  ;;  %v172_v54 = vadd.f32 %v171_v51, %v83_v45 }
 0x202   :  { %v173_v53 = vpop.f32.mrf.mxu0 }
 0x203   :  { %191 = vst.msk [vmem:[%s315_s5] sm:$0xff] %vm190_vm3, %v210_v52  ;;  %v174_v55 = vadd.f32 %v173_v53, %v87_v46 }
 0x205   :  { %v211_v56 = vpack.c.bf16 %v174_v55, %v172_v54 }
 0x207   :  { %192 = vst.msk [vmem:[%s315_s5 + $0x8] sm:$0xff] %vm190_vm3, %v211_v56 }

// kernel: residual_attention_block.6
= control target key start
LH: loop header
LB: loop body
LE: loop exit
PB: predicated region body
PF: predicated region fallthrough
CT: control target
= control target key end

     0   :  { %vm23_vm0 = vcmask 523264   ;;  %v266_v15 = vmov 0   ;;  %v80_v40 = vlaneseq  ;;  %s347_s0 = inlined_call_operand.vmem [shape: f32[16,64], index: 0, kind: input, shape index: {}]   ;;  %s348_s3 = inlined_call_operand.vmem [shape: bf16[64,256], index: 3, kind: input, shape index: {}]   ;;  %s349_s1 = inlined_call_operand.vmem [shape: f32[1,64], index: 1, kind: input, shape index: {}]   ;;  %s350_s2 = inlined_call_operand.vmem [shape: f32[1,64], index: 2, kind: input, shape index: {}]   ;;  %s351_s4 = inlined_call_operand.vmem [shape: f32[1,256], index: 4, kind: input, shape index: {}]   ;;  %s352_s5 = inlined_call_operand.vmem [shape: bf16[16,256], index: 5, kind: output, shape index: {}]  }
   0x1   :  { %v21_v0 = vld [vmem:[%s347_s0] sm:$0xff]  ;;  %v22_v1 = vld [vmem:[%s347_s0 + $0x8] sm:$0xff]  ;;  %v234_v14 = vld [vmem:[%s348_s3 + $0x34] ss:$8 sps:$4 sm:$0xff]   ;;  %165 = vmatprep.mubr.bf16.mxu0 %v266_v15 }
   0x2   :  { %v24_v2 = vsel %vm23_vm0, %v21_v0, 0.0  ;;  %v27_v3 = vsel %vm23_vm0, %v22_v1, 0.0  ;;  %v236_v16 = vld [vmem:[%s348_s3 + $0x30] ss:$8 sps:$4 sm:$0xff]   ;;  %141 = vmatprep.subr.bf16.mxu0 %v234_v14  ;;  %v237_v17 = vld [vmem:[%s348_s3 + $0x24] ss:$8 sps:$4 sm:$0xff]  }
   0x3   :  { %25 = vadd.xlane.f32.xlu0 %v24_v2  ;;  %142 = vmatpush1.bf16.msra.mxu0 %v236_v16  ;;  %v239_v18 = vld [vmem:[%s348_s3 + $0x20] ss:$8 sps:$4 sm:$0xff]   ;;  %v240_v19 = vld [vmem:[%s348_s3 + $0x14] ss:$8 sps:$4 sm:$0xff]   ;;  %v242_v20 = vld [vmem:[%s348_s3 + $0x10] ss:$8 sps:$4 sm:$0xff]  }
   0x4   :  { %143 = vmatprep.subr.bf16.mxu0 %v237_v17  ;;  %v243_v21 = vld [vmem:[%s348_s3 + $0x4] ss:$8 sps:$4 sm:$0xff]   ;;  %v245_v22 = vld [vmem:[%s348_s3] ss:$8 sps:$4 sm:$0xff]   ;;  %v81_v41 = vshrl.u32 %v80_v40, 7 }
   0x5   :  { %v218_v31 = vld [vmem:[%s349_s1] ss:$0 sm:$0xff] }
   0x6   :  { %v219_v35 = vld [vmem:[%s350_s2] ss:$0 sm:$0xff]  ;;  %v82_v42 = vsub.s32 0, %v81_v41  ;;  %v86_v44 = vsub.s32 1, %v81_v41 }
   0x7   :  { %28 = vadd.xlane.f32.xlu0 %v27_v3  ;;  %144 = vmatpush1.bf16.msra.mxu0 %v239_v18  ;;  %v78_v43 = vld [vmem:[%s351_s4] sm:$0x3] }
   0x8   :  { %145 = vmatprep.subr.bf16.mxu0 %v240_v19  ;;  %v83_v45 = vrot.slane %v78_v43, %v82_v42  ;;  %v87_v46 = vrot.slane %v78_v43, %v86_v44 }
   0xb   :  { %146 = vmatpush1.bf16.msra.mxu0 %v242_v20 }
   0xc   :  { %147 = vmatprep.subr.bf16.mxu0 %v243_v21 }
   0xf   :  { %148 = vmatpush1.bf16.msra.mxu0 %v245_v22 }
  0x8c   :  { %v26_v4 = vpop.xlane.xlu0 %25 }
  0x8d   :  { %v31_v5 = vmul.f32 0.015625, %v26_v4 }
  0x8f   :  { %v33_v6 = vsub.f32 %v21_v0, %v31_v5 }
  0x90   :  { %v29_v7 = vpop.xlane.xlu0 %28 }
  0x91   :  { %v32_v8 = vmul.f32 0.015625, %v29_v7  ;;  %v35_v9 = vmul.f32 %v33_v6, %v33_v6 }
  0x93   :  { %v34_v10 = vsub.f32 %v22_v1, %v32_v8  ;;  %v37_v11 = vsel %vm23_vm0, %v35_v9, 0.0 }
  0x94   :  { %38 = vadd.xlane.f32.xlu1 %v37_v11 }
  0x95   :  { %v36_v12 = vmul.f32 %v34_v10, %v34_v10 }
  0x97   :  { %v40_v13 = vsel %vm23_vm0, %v36_v12, 0.0 }
  0x98   :  { %41 = vadd.xlane.f32.xlu1 %v40_v13 }
 0x11d   :  { %v39_v23 = vpop.xlane.xlu1 %38 }
 0x11e   :  { %v43_v24 = vmul.f32 0.015625, %v39_v23 }
 0x120   :  { %v45_v25 = vadd.f32 1e-05, %v43_v24 }
 0x121   :  { %v42_v26 = vpop.xlane.xlu1 %41 }
 0x122   :  { %246 = vrsqrt.f32 %v45_v25  ;;  %v44_v27 = vmul.f32 0.015625, %v42_v26 }
 0x124   :  { %v46_v28 = vadd.f32 1e-05, %v44_v27 }
 0x126   :  { %248 = vrsqrt.f32 %v46_v28 }
 0x12f   :  { %v247_v29 = vpop.eup %246 }
 0x130   :  { %v49_v30 = vmul.f32 %v247_v29, %v33_v6 }
 0x132   :  { %v58_v34 = vmul.f32 %v218_v31, %v49_v30 }
 0x133   :  { %v249_v32 = vpop.eup %248 }
 0x134   :  { %v50_v33 = vmul.f32 %v249_v32, %v34_v10  ;;  %v67_v37 = vadd.f32 %v219_v35, %v58_v34 }
 0x136   :  { %v59_v36 = vmul.f32 %v218_v31, %v50_v33 }
 0x138   :  { %v68_v38 = vadd.f32 %v219_v35, %v59_v36 }
 0x13a   :  { %v69_v39 = vpack.c.bf16 %v68_v38, %v67_v37 }
 0x13c   :  { %228 = vmatmul.mubr.msk.bf16.vlgmr.msra.gmra.mxu0 %vm23_vm0, %v69_v39 }
 0x1fc   :  { %v167_v47 = vpop.f32.mrf.mxu0 }
 0x1fd   :  { %v168_v48 = vadd.f32 %v167_v47, %v83_v45 }
 0x1fe   :  { %v169_v49 = vpop.f32.mrf.mxu0 }
 0x1ff   :  { %v176_v50 = vmul.f32 -1.702, %v168_v48  ;;  %v170_v51 = vadd.f32 %v169_v49, %v87_v46 }
 0x200   :  { %v171_v52 = vpop.f32.mrf.mxu0 }
 0x201   :  { %v180_v53 = vmul.f32 1.442695, %v176_v50  ;;  %v177_v54 = vmul.f32 -1.702, %v170_v51  ;;  %v172_v55 = vadd.f32 %v171_v52, %v83_v45 }
 0x202   :  { %v173_v56 = vpop.f32.mrf.mxu0 }
 0x203   :  { %250 = vpow2.f32 %v180_v53  ;;  %v182_v57 = vmul.f32 1.442695, %v177_v54  ;;  %v178_v58 = vmul.f32 -1.702, %v172_v55  ;;  %v174_v59 = vadd.f32 %v173_v56, %v87_v46 }
 0x205   :  { %252 = vpow2.f32 %v182_v57  ;;  %v184_v60 = vmul.f32 1.442695, %v178_v58  ;;  %v179_v61 = vmul.f32 -1.702, %v174_v59 }
 0x207   :  { %254 = vpow2.f32 %v184_v60  ;;  %v186_v62 = vmul.f32 1.442695, %v179_v61 }
 0x209   :  { %256 = vpow2.f32 %v186_v62 }
 0x210   :  { %v251_v63 = vpop.eup %250 }
 0x211   :  { %v188_v0 = vadd.f32 1.0, %v251_v63 }
 0x212   :  { %v253_v1 = vpop.eup %252 }
 0x213   :  { %258 = vrcp.f32 %v188_v0  ;;  %v189_v2 = vadd.f32 1.0, %v253_v1 }
 0x214   :  { %v255_v3 = vpop.eup %254 }
 0x215   :  { %260 = vrcp.f32 %v189_v2  ;;  %v190_v4 = vadd.f32 1.0, %v255_v3 }
 0x216   :  { %v257_v5 = vpop.eup %256 }
 0x217   :  { %262 = vrcp.f32 %v190_v4  ;;  %v191_v6 = vadd.f32 1.0, %v257_v5 }
 0x219   :  { %264 = vrcp.f32 %v191_v6 }
 0x220   :  { %v259_v7 = vpop.eup %258 }
 0x221   :  { %v196_v9 = vmul.f32 %v259_v7, %v168_v48 }
 0x222   :  { %v261_v8 = vpop.eup %260 }
 0x223   :  { %v197_v10 = vmul.f32 %v261_v8, %v170_v51 }
 0x224   :  { %v263_v11 = vpop.eup %262 }
 0x225   :  { %v231_v12 = vpack.c.bf16 %v197_v10, %v196_v9  ;;  %v198_v14 = vmul.f32 %v263_v11, %v172_v55 }
 0x226   :  { %v265_v13 = vpop.eup %264 }
 0x227   :  { %212 = vst [vmem:[%s352_s5] sm:$0xff] %v231_v12  ;;  %v199_v15 = vmul.f32 %v265_v13, %v174_v59 }
 0x229   :  { %v232_v16 = vpack.c.bf16 %v199_v15, %v198_v14 }
 0x22b   :  { %213 = vst [vmem:[%s352_s5 + $0x8] sm:$0xff] %v232_v16 }

// kernel: residual_attention_block.5
= control target key start
LH: loop header
LB: loop body
LE: loop exit
PB: predicated region body
PF: predicated region fallthrough
CT: control target
= control target key end

     0   :  { %s1032_s15 = smov 0   ;;  %s1150_s0 = inlined_call_operand.vmem [shape: bf16[2,8,192], index: 0, kind: input, shape index: {}]   ;;  %s1151_s1 = inlined_call_operand.vmem [shape: bf16[64,64], index: 1, kind: input, shape index: {}]   ;;  %s1152_s2 = inlined_call_operand.vmem [shape: f32[1,64], index: 2, kind: input, shape index: {}]   ;;  %s1153_s3 = inlined_call_operand.vmem [shape: f32[2,8,64], index: 3, kind: input, shape index: {}]   ;;  %s1154_s4 = inlined_call_operand.vmem [shape: f32[2,8,64], index: 4, kind: output, shape index: {}]  }
   0x1 LB: > { %s842_s16 = sadd.s32 4294967295, %s996_s15   ;;  %p846_p0 = scmp.ge.s32.totalorder %s996_s15, 1  ;;  %s996_s15 = sphi %s1032_s15, %s14_s15  }
   0x2   : > { %p171_p1 = scmp.lt.s32.totalorder %s996_s15, 3 }
   0x4   : > { %p172_p2 = pnand %p846_p0, %p171_p1 }
   0x5   : > { %p200_p3 = scmp.lt.s32.totalorder (!%p172_p2), %s842_s16, 1  ;;  %s1000_s21 = smov (!%p172_p2), 64  }
   0x6   : > { %175 = sbr.rel (%p172_p2) target bundleno = 1060 (0x424), region = 36  ;;  %s1001_s22 = smov (!%p172_p2), 112  }
   0x7   : > { %s1002_s23 = smov (!%p172_p2), 48   ;;  %s1003_s24 = smov (!%p172_p2), 32  }
   0x8   : > { %s1004_s25 = smov (!%p172_p2), 96   ;;  %s1005_s26 = smov (!%p172_p2), 16  }
   0x9   : > { %s1006_s27 = smov (!%p172_p2), 80  }
   0xb   : > { %v998_v0 = vmov 0.0   ;;  %s1156_s16 = smov (!%p200_p3, %s842_s16), 1  ;;  %vm999_vm0 = vmmov 0   ;;  %vm225_vm1 = vcmask 130048   ;;  %v215_v14 = vlaneseq }
   0xc   : > { %891 = vmatprep.subr.bf16.mxu0 %v998_v0  ;;  %903 = vmatprep.subr.bf16.mxu1 %v998_v0  ;;  %s1046_s17 = sshll.u32 %s1156_s16, 3  ;;  %vm274_vm3 = vcmask 64512   ;;  %vm290_vm4 = vcmask 1043456   ;;  %vm685_vm5 = vcmask 261120   ;;  %vm687_vm6 = vcmask 392192  }
   0xd   : > { %893 = vmatprep.mubr.msk.bf16.mxu0 %vm999_vm0, %v998_v0  ;;  %905 = vmatprep.mubr.msk.bf16.mxu1 %vm999_vm0, %v998_v0  ;;  %s204_s20 = scalar_lea.vmem %s1150_s0, %s1046_s17  ;;  %v216_v15 = vshrl.u32 %v215_v14, 7  ;;  %v218_v16 = vand.u32 127, %v215_v14  ;;  %vm722_vm7 = vcmask 523264   ;;  %s208_s12 = scalar_lea.vmem %s1153_s3, %s1046_s17 }
   0xe   : > { %v1052_v1 = vld [vmem:[%s204_s20] sm:$0xff]  ;;  %s212_s19 = scalar_lea.vmem %s1154_s4, %s1046_s17 }
   0xf   : > { %v851_v2 = vcombine.low %v1052_v1, %v1052_v1  ;;  %vm219_vm2 = vcmp.le.s32.totalorder %v218_v16, %v216_v15  ;;  %v853_v37 = vcombine.high %v1052_v1, %v1052_v1 }
  0x11   : > { %223 = vrot.lane.b32.xlu0 %v851_v2, %s1000_s21  ;;  %336 = vrot.lane.b32.xlu1 %v851_v2, %s1001_s22  ;;  %v292_v43 = vsel %vm290_vm4, %v853_v37, 0 }
  0x15   : > { %338 = vrot.lane.b32.xlu0 %v851_v2, %s1002_s23  ;;  %450 = vrot.lane.b32.xlu1 %v851_v2, %s1003_s24 }
  0x19   : > { %448 = vrot.lane.b32.xlu0 %v851_v2, %s1004_s25  ;;  %562 = vrot.lane.b32.xlu1 %v851_v2, %s1005_s26 }
  0x1d   : > { %560 = vrot.lane.b32.xlu0 %v851_v2, %s1006_s27 }
  0x83   : > { %v224_v3 = vpop.permute.xlu0 %223  ;;  %v337_v5 = vpop.permute.xlu1 %336 }
  0x84   : > { %v230_v4 = vsel %vm225_vm1, %v224_v3, 0 }
  0x85   : > { %892 = vmatpush3.bf16.xpose.msra.mxu0 %v230_v4 }
  0x86   : > { %897 = vmatprep.subr.bf16.mxu0 %v998_v0 }
  0x87   : > { %v339_v6 = vpop.permute.xlu0 %338  ;;  %v451_v8 = vpop.permute.xlu1 %450 }
  0x88   : > { %v344_v7 = vsel %vm225_vm1, %v339_v6, 0  ;;  %v456_v9 = vsel %vm225_vm1, %v451_v8, 0 }
  0x89   : > { %904 = vmatpush3.bf16.xpose.msra.mxu1 %v344_v7 }
  0x8a   : > { %915 = vmatprep.subr.bf16.mxu1 %v998_v0 }
  0x8b   : > { %v563_v10 = vpop.permute.xlu1 %562  ;;  %v449_v11 = vpop.permute.xlu0 %448 }
  0x8c   : > { %894 = vmatmul.mubr.msk.bf16.vlgmr.msra.gmra.mxu0 %vm225_vm1, %v1052_v1  ;;  %v568_v12 = vsel %vm225_vm1, %v563_v10, 0 }
  0x8d   : > { %899 = vmatprep.mubr.msk.bf16.mxu0 %vm999_vm0, %v998_v0  ;;  %898 = vmatpush3.bf16.msra.mxu0 %v292_v43 }
  0x8e   : > { %909 = vmatprep.subr.bf16.mxu0 %v998_v0 }
  0x8f   : > { %v561_v13 = vpop.permute.xlu0 %560 }
  0x90   : > { %906 = vmatmul.mubr.msk.bf16.vlgmr.msra.gmra.mxu1 %vm225_vm1, %v337_v5 }
  0x91   : > { %916 = vmatpush3.bf16.xpose.msra.mxu1 %v456_v9  ;;  %917 = vmatprep.mubr.msk.bf16.mxu1 %vm999_vm0, %v998_v0 }
  0x92   : > { %927 = vmatprep.subr.bf16.mxu1 %v998_v0 }
  0x98   : > { %918 = vmatmul.mubr.msk.bf16.vlgmr.msra.gmra.mxu1 %vm225_vm1, %v449_v11 }
  0x99   : > { %928 = vmatpush3.bf16.xpose.msra.mxu1 %v568_v12  ;;  %929 = vmatprep.mubr.msk.bf16.mxu1 %vm999_vm0, %v998_v0 }
  0x9a   : > { %939 = vmatprep.subr.bf16.mxu1 %v998_v0 }
  0xa0   : > { %930 = vmatmul.mubr.msk.bf16.vlgmr.msra.gmra.mxu1 %vm225_vm1, %v561_v13 }
  0xa1   : > { %947 = vmatprep.mubr.msk.bf16.mxu1 %vm999_vm0, %v998_v0 }
 0x14c   : > { %v266_v17 = vpop.f32.mrf.mxu0 }
 0x14d   : > { %v272_v18 = vmul.f32 0.25, %v266_v17 }
 0x14e   : > { %v895_v19 = vpop.f32.mrf.mxu0 }
 0x14f   : > { %v273_v20 = vsel %vm219_vm2, %v272_v18, -inf }
 0x150   : > { %v269_v21 = vpop.f32.mrf.mxu0  ;;  %v380_v22 = vpop.f32.mrf.mxu1  ;;  %v275_v23 = vsel %vm274_vm3, %v273_v20, -inf }
 0x151   : > { %v386_v24 = vmul.f32 0.25, %v380_v22  ;;  %276 = vmax.xlane.f32.xlu1 %v275_v23  ;;  %v971_v23 = vld [vmem:[%s1151_s1 + $0x10] sm:$0xff]  }
 0x152   : > { %v896_v25 = vpop.f32.mrf.mxu0  ;;  %v907_v26 = vpop.f32.mrf.mxu1 }
 0x153   : > { %v387_v27 = vsel %vm219_vm2, %v386_v24, -inf }
 0x154   : > { %v383_v28 = vpop.f32.mrf.mxu1  ;;  %v388_v29 = vsel %vm274_vm3, %v387_v27, -inf }
 0x155   : > { %389 = vmax.xlane.f32.xlu0 %v388_v29 }
 0x156   : > { %v908_v30 = vpop.f32.mrf.mxu1 }
 0x158   : > { %v492_v31 = vpop.f32.mrf.mxu1 }
 0x159   : > { %v498_v32 = vmul.f32 0.25, %v492_v31 }
 0x15a   : > { %v919_v33 = vpop.f32.mrf.mxu1 }
 0x15b   : > { %v499_v34 = vsel %vm219_vm2, %v498_v32, -inf }
 0x15c   : > { %v500_v35 = vsel %vm274_vm3, %v499_v34, -inf  ;;  %v495_v36 = vpop.f32.mrf.mxu1 }
 0x15d   : > { %501 = vmax.xlane.f32.xlu0 %v500_v35  ;;  %v973_v36 = vld [vmem:[%s1151_s1] sm:$0xff]  }
 0x15e   : > { %v920_v38 = vpop.f32.mrf.mxu1 }
 0x160   : > { %v604_v39 = vpop.f32.mrf.mxu1 }
 0x161   : > { %v610_v44 = vmul.f32 0.25, %v604_v39 }
 0x162   : > { %510 = vrot.lane.b32.xlu1 %v853_v37, %s1004_s25  ;;  %v931_v40 = vpop.f32.mrf.mxu1 }
 0x163   : > { %v611_v45 = vsel %vm219_vm2, %v610_v44, -inf }
 0x164   : > { %v607_v41 = vpop.f32.mrf.mxu1  ;;  %v612_v46 = vsel %vm274_vm3, %v611_v45, -inf }
 0x166   : > { %v932_v42 = vpop.f32.mrf.mxu1 }
 0x173   : > { %398 = vrot.lane.b32.xlu0 %v853_v37, %s1001_s22 }
 0x186   : > { %613 = vmax.xlane.f32.xlu1 %v612_v46 }
 0x197   : > { %622 = vrot.lane.b32.xlu1 %v853_v37, %s1006_s27 }
 0x1da   : > { %v277_v47 = vpop.xlane.xlu1 %276 }
 0x1db   : > { %v278_v48 = vsub.f32 %v273_v20, %v277_v47  ;;  %v970_v20 = vld [vmem:[%s1151_s1 + $0x18] sm:$0xff]  }
 0x1dc   : > { %940 = vmatpush3.bf16.msra.mxu1 %v970_v20 }
 0x1dd   : > { %v279_v49 = vmul.f32 1.442695, %v278_v48  ;;  %941 = vmatprep.subr.bf16.mxu1 %v998_v0 }
 0x1de   : > { %v390_v50 = vpop.xlane.xlu0 %389  ;;  %v511_v62 = vpop.permute.xlu1 %510 }
 0x1df   : > { %974 = vpow2.f32 %v279_v49  ;;  %v391_v51 = vsub.f32 %v387_v27, %v390_v50  ;;  %v516_v1 = vsel %vm290_vm4, %v511_v62, 0  ;;  %v972_v27 = vld [vmem:[%s1151_s1 + $0x8] sm:$0xff]  }
 0x1e0   : > { %942 = vmatpush3.bf16.msra.mxu1 %v971_v23 }
 0x1e1   : > { %v392_v52 = vmul.f32 1.442695, %v391_v51  ;;  %943 = vmatprep.subr.bf16.mxu1 %v998_v0 }
 0x1e3   : > { %976 = vpow2.f32 %v392_v52  ;;  %v766_v52 = vld [vmem:[%s208_s12] sm:$0xff] }
 0x1e4   : > { %944 = vmatpush3.bf16.msra.mxu1 %v972_v27 }
 0x1e5   : > { %945 = vmatprep.subr.bf16.mxu1 %v998_v0 }
 0x1e6   : > { %v502_v53 = vpop.xlane.xlu0 %501 }
 0x1e7   : > { %v503_v54 = vsub.f32 %v499_v34, %v502_v53 }
 0x1e8   : > { %946 = vmatpush3.bf16.msra.mxu1 %v973_v36 }
 0x1e9   : > { %v504_v55 = vmul.f32 1.442695, %v503_v54  ;;  %v866_v54 = vld [vmem:[%s1152_s2] ss:$0 sm:$0xff] }
 0x1ea   : > { %v399_v56 = vpop.permute.xlu0 %398 }
 0x1eb   : > { %978 = vpow2.f32 %v504_v55  ;;  %v404_v59 = vsel %vm290_vm4, %v399_v56, 0 }
 0x1ec   : > { %v975_v57 = vpop.eup %974 }
 0x1ed   : > { %v284_v58 = vpack.c.bf16 %v975_v57, %v975_v57  ;;  %v281_v13 = vsel %vm274_vm3, %v975_v57, 0.0 }
 0x1ef   : > { %900 = vmatmul.mubr.msk.bf16.vlgmr.msra.gmra.mxu0 %vm274_vm3, %v284_v58 }
 0x1f0   : > { %v977_v60 = vpop.eup %976  ;;  %910 = vmatpush3.bf16.msra.mxu0 %v404_v59  ;;  %911 = vmatprep.mubr.msk.bf16.mxu0 %vm999_vm0, %v998_v0 }
 0x1f1   : > { %v394_v61 = vsel %vm274_vm3, %v977_v60, 0.0  ;;  %921 = vmatprep.subr.bf16.mxu0 %v998_v0  ;;  %v397_v63 = vpack.c.bf16 %v977_v60, %v977_v60 }
 0x1f2   : > { %395 = vadd.xlane.f32.xlu0 %v394_v61 }
 0x1f7   : > { %912 = vmatmul.mubr.msk.bf16.vlgmr.msra.gmra.mxu0 %vm274_vm3, %v397_v63 }
 0x1f8   : > { %v979_v2 = vpop.eup %978  ;;  %922 = vmatpush3.bf16.msra.mxu0 %v516_v1  ;;  %923 = vmatprep.mubr.msk.bf16.mxu0 %vm999_vm0, %v998_v0 }
 0x1f9   : > { %v506_v3 = vsel %vm274_vm3, %v979_v2, 0.0  ;;  %933 = vmatprep.subr.bf16.mxu0 %v998_v0  ;;  %v509_v4 = vpack.c.bf16 %v979_v2, %v979_v2 }
 0x1fa   : > { %507 = vadd.xlane.f32.xlu1 %v506_v3 }
 0x1ff   : > { %924 = vmatmul.mubr.msk.bf16.vlgmr.msra.gmra.mxu0 %vm274_vm3, %v509_v4 }
 0x200   : > { %935 = vmatprep.mubr.msk.bf16.mxu0 %vm999_vm0, %v998_v0 }
 0x20f   : > { %v614_v5 = vpop.xlane.xlu1 %613 }
 0x210   : > { %v615_v6 = vsub.f32 %v611_v45, %v614_v5 }
 0x212   : > { %v616_v7 = vmul.f32 1.442695, %v615_v6 }
 0x213   : > { %v623_v8 = vpop.permute.xlu1 %622 }
 0x214   : > { %980 = vpow2.f32 %v616_v7  ;;  %v628_v9 = vsel %vm290_vm4, %v623_v8, 0 }
 0x215   : > { %934 = vmatpush3.bf16.msra.mxu0 %v628_v9 }
 0x221   : > { %v981_v10 = vpop.eup %980 }
 0x222   : > { %v618_v11 = vsel %vm274_vm3, %v981_v10, 0.0  ;;  %v621_v12 = vpack.c.bf16 %v981_v10, %v981_v10 }
 0x223   : > { %619 = vadd.xlane.f32.xlu0 %v618_v11 }
 0x224   : > { %936 = vmatmul.mubr.msk.bf16.vlgmr.msra.gmra.mxu0 %vm274_vm3, %v621_v12 }
 0x227   : > { %282 = vadd.xlane.f32.xlu0 %v281_v13 }
 0x27b   : > { %v396_v14 = vpop.xlane.xlu0 %395 }
 0x27c   : > { %982 = vrcp.f32 %v396_v14 }
 0x283   : > { %v508_v15 = vpop.xlane.xlu1 %507 }
 0x284   : > { %984 = vrcp.f32 %v508_v15 }
 0x289   : > { %v983_v21 = vpop.eup %982 }
 0x291   : > { %v985_v29 = vpop.eup %984 }
 0x2ac   : > { %v620_v35 = vpop.xlane.xlu0 %619 }
 0x2ad   : > { %986 = vrcp.f32 %v620_v35 }
 0x2af   : > { %v328_v16 = vpop.f32.mrf.mxu0 }
 0x2b0   : > { %v283_v42 = vpop.xlane.xlu0 %282 }
 0x2b1   : > { %v901_v17 = vpop.f32.mrf.mxu0  ;;  %988 = vrcp.f32 %v283_v42 }
 0x2b3   : > { %v331_v18 = vpop.f32.mrf.mxu0 }
 0x2b5   : > { %v902_v19 = vpop.f32.mrf.mxu0 }
 0x2b7   : > { %v440_v22 = vpop.f32.mrf.mxu0 }
 0x2b8   : > { %v447_v24 = vmul.f32 %v983_v21, %v440_v22 }
 0x2b9   : > { %v913_v25 = vpop.f32.mrf.mxu0 }
 0x2ba   : > { %673 = vrot.lane.b32.xlu1 %v447_v24, %s1005_s26  ;;  %v987_v37 = vpop.eup %986 }
 0x2bb   : > { %v443_v26 = vpop.f32.mrf.mxu0 }
 0x2bd   : > { %v914_v28 = vpop.f32.mrf.mxu0 }
 0x2be   : > { %v989_v43 = vpop.eup %988 }
 0x2bf   : > { %v552_v30 = vpop.f32.mrf.mxu0  ;;  %v335_v45 = vmul.f32 %v989_v43, %v328_v16 }
 0x2c0   : > { %v559_v31 = vmul.f32 %v985_v29, %v552_v30 }
 0x2c1   : > { %v925_v32 = vpop.f32.mrf.mxu0 }
 0x2c2   : > { %677 = vrot.lane.b32.xlu0 %v559_v31, %s1003_s24 }
 0x2c3   : > { %v555_v33 = vpop.f32.mrf.mxu0 }
 0x2c5   : > { %v926_v34 = vpop.f32.mrf.mxu0 }
 0x2e4   : > { %v664_v38 = vpop.f32.mrf.mxu0 }
 0x2e5   : > { %v671_v39 = vmul.f32 %v987_v37, %v664_v38 }
 0x2e6   : > { %v937_v40 = vpop.f32.mrf.mxu0 }
 0x2e7   : > { %681 = vrot.lane.b32.xlu1 %v671_v39, %s1002_s23 }
 0x2e8   : > { %v667_v41 = vpop.f32.mrf.mxu0 }
 0x2ea   : > { %v938_v0 = vpop.f32.mrf.mxu0 }
 0x32c   : > { %v674_v44 = vpop.permute.xlu1 %673 }
 0x32d   : > { %v684_v47 = vsel %vm225_vm1, %v335_v45, %v674_v44 }
 0x334   : > { %v678_v46 = vpop.permute.xlu0 %677 }
 0x335   : > { %v686_v48 = vsel %vm685_vm5, %v684_v47, %v678_v46 }
 0x359   : > { %v682_v49 = vpop.permute.xlu1 %681 }
 0x35a   : > { %v688_v50 = vsel %vm687_vm6, %v686_v48, %v682_v49 }
 0x35b   : > { %v689_v51 = vpack.c.bf16 %v688_v50, %v688_v50 }
 0x35d   : > { %948 = vmatmul.mubr.msk.bf16.vlgmr.msra.gmra.mxu1 %vm722_vm7, %v689_v51 }
 0x41d   : > { %v760_v53 = vpop.f32.mrf.mxu1 }
 0x41e   : > { %v767_v55 = vadd.f32 %v766_v52, %v760_v53 }
 0x41f   : > { %v949_v56 = vpop.f32.mrf.mxu1 }
 0x420   : > { %v775_v57 = vadd.f32 %v866_v54, %v767_v55 }
 0x421   : > { %v763_v58 = vpop.f32.mrf.mxu1 }
 0x422   : > { %776 = vst.msk [vmem:[%s212_s19] sm:$0xff] %vm722_vm7, %v775_v57 }
 0x423   : > { %v950_v59 = vpop.f32.mrf.mxu1 }
 0x424 PF: > { %s14_s15 = sadd.s32 1, %s996_s15  }
 0x425   : > { %p11_p4 = scmp.ge.s32.totalorder %s14_s15, 4  }
 0x427   :  { %13 = sbr.rel (!%p11_p4) target bundleno = 1 (0x1), region = 69 }

// kernel: residual_attention_block.7
= control target key start
LH: loop header
LB: loop body
LE: loop exit
PB: predicated region body
PF: predicated region fallthrough
CT: control target
= control target key end

     0   :  { %vm212_vm0 = vcmask 523264   ;;  %s373_s1 = inlined_call_operand.vmem [shape: bf16[256,64], index: 1, kind: input, shape index: {}]   ;;  %s374_s0 = inlined_call_operand.vmem [shape: bf16[16,256], index: 0, kind: input, shape index: {}]   ;;  %s375_s3 = inlined_call_operand.vmem [shape: f32[16,64], index: 3, kind: input, shape index: {}]   ;;  %s376_s2 = inlined_call_operand.vmem [shape: f32[1,64], index: 2, kind: input, shape index: {}]   ;;  %s377_s4 = inlined_call_operand.vmem [shape: f32[16,64], index: 4, kind: output, shape index: {}]  }
   0x1   :  { %v260_v0 = vld [vmem:[%s373_s1 + $0x78] sm:$0xff]   ;;  %v262_v2 = vld [vmem:[%s373_s1 + $0x70] sm:$0xff]   ;;  %v264_v4 = vld [vmem:[%s373_s1 + $0x68] sm:$0xff]  }
   0x2   :  { %v261_v1 = vld [vmem:[%s373_s1 + $0x38] sm:$0xff]   ;;  %238 = vmatprep.subr.bf16.mxu0 %v260_v0  ;;  %v263_v3 = vld [vmem:[%s373_s1 + $0x30] sm:$0xff]   ;;  %v265_v5 = vld [vmem:[%s373_s1 + $0x28] sm:$0xff]  }
   0x3   :  { %239 = vmatpush3.bf16.msra.mxu0 %v261_v1  ;;  %v266_v6 = vld [vmem:[%s373_s1 + $0x60] sm:$0xff]   ;;  %v268_v8 = vld [vmem:[%s373_s1 + $0x58] sm:$0xff]   ;;  %v270_v10 = vld [vmem:[%s373_s1 + $0x50] sm:$0xff]  }
   0x4   :  { %240 = vmatprep.subr.bf16.mxu0 %v262_v2  ;;  %v267_v7 = vld [vmem:[%s373_s1 + $0x20] sm:$0xff]   ;;  %v269_v9 = vld [vmem:[%s373_s1 + $0x18] sm:$0xff]   ;;  %v271_v12 = vld [vmem:[%s373_s1 + $0x10] sm:$0xff]  }
   0x5   :  { %v278_v11 = vld [vmem:[%s374_s0 + $0x4] ss:$8 sps:$4 sm:$0xff]   ;;  %v276_v17 = vld [vmem:[%s374_s0] ss:$8 sps:$4 sm:$0xff]  }
   0x6   :  { %190 = vmatprep.mubr.bf16.mxu0 %v278_v11  ;;  %v272_v13 = vld [vmem:[%s373_s1 + $0x48] sm:$0xff]   ;;  %v274_v15 = vld [vmem:[%s373_s1 + $0x40] sm:$0xff]  }
   0x7   :  { %241 = vmatpush3.bf16.msra.mxu0 %v263_v3  ;;  %v273_v14 = vld [vmem:[%s373_s1 + $0x8] sm:$0xff]   ;;  %v275_v16 = vld [vmem:[%s373_s1] sm:$0xff]  }
   0x8   :  { %242 = vmatprep.subr.bf16.mxu0 %v264_v4  ;;  %v199_v20 = vld [vmem:[%s375_s3] sm:$0xff]  ;;  %v200_v26 = vld [vmem:[%s375_s3 + $0x8] sm:$0xff] }
   0x9   :  { %v237_v22 = vld [vmem:[%s376_s2] ss:$0 sm:$0xff] }
   0xb   :  { %243 = vmatpush3.bf16.msra.mxu0 %v265_v5 }
   0xc   :  { %244 = vmatprep.subr.bf16.mxu0 %v266_v6 }
   0xf   :  { %245 = vmatpush3.bf16.msra.mxu0 %v267_v7 }
  0x10   :  { %246 = vmatprep.subr.bf16.mxu0 %v268_v8 }
  0x13   :  { %247 = vmatpush3.bf16.msra.mxu0 %v269_v9 }
  0x14   :  { %248 = vmatprep.subr.bf16.mxu0 %v270_v10 }
  0x17   :  { %249 = vmatpush3.bf16.msra.mxu0 %v271_v12 }
  0x18   :  { %250 = vmatprep.subr.bf16.mxu0 %v272_v13 }
  0x1b   :  { %251 = vmatpush3.bf16.msra.mxu0 %v273_v14 }
  0x1c   :  { %252 = vmatprep.subr.bf16.mxu0 %v274_v15 }
  0x1f   :  { %253 = vmatpush3.bf16.msra.mxu0 %v275_v16 }
  0x22   :  { %191 = vmatmul.mubr.bf16.vlgmr.msra.gmra.mxu0 %v276_v17 }
  0xe2   :  { %v254_v18 = vpop.f32.mrf.mxu0 }
  0xe4   :  { %v255_v19 = vpop.f32.mrf.mxu0 }
  0xe5   :  { %v256_v21 = vadd.f32 %v255_v19, %v254_v18 }
  0xe6   :  { %v257_v23 = vpop.f32.mrf.mxu0 }
  0xe7   :  { %v201_v24 = vadd.f32 %v256_v21, %v199_v20 }
  0xe8   :  { %v258_v25 = vpop.f32.mrf.mxu0 }
  0xe9   :  { %v210_v27 = vadd.f32 %v237_v22, %v201_v24  ;;  %v259_v28 = vadd.f32 %v258_v25, %v257_v23 }
  0xeb   :  { %213 = vst.msk [vmem:[%s377_s4] sm:$0xff] %vm212_vm0, %v210_v27  ;;  %v202_v29 = vadd.f32 %v259_v28, %v200_v26 }
  0xed   :  { %v211_v30 = vadd.f32 %v237_v22, %v202_v29 }
  0xef   :  { %214 = vst.msk [vmem:[%s377_s4 + $0x8] sm:$0xff] %vm212_vm0, %v211_v30 }

</bundles_post_ra>
